<compile_context>
chip_gen: v6e
topology: v6e:2x2x1
jax: 0.10.0
libtpu: 0.0.40
codegen_flags: <defaults>
</compile_context>

<pallas_src>
import jax
import jax.numpy as jnp
from jax.experimental import pallas as pl
from jax.experimental.pallas import tpu as pltpu


def _round_up(n, m):
    return (n + m - 1) // m * m


def _sigmoid(z):
    # sigmoid(z) == 0.5 * tanh(0.5 * z) + 0.5 : one EUP transcendental per
    # gate (vs exp + reciprocal), exact, and bf16-EUP-free (safe on v5e).
    return 0.5 * jnp.tanh(0.5 * z) + 0.5


def _make_decoder_kernel(num_layers, hidden, compute_dtype):
    n_in = 3 + 2 * num_layers + 2  # x, h0, c0, W_l..., b_l..., Wfc, bfc

    def kernel(*refs):
        x_ref, h0_ref, c0_ref = refs[0], refs[1], refs[2]
        w_refs = refs[3:3 + num_layers]
        b_refs = refs[3 + num_layers:3 + 2 * num_layers]
        wfc_ref = refs[3 + 2 * num_layers]
        bfc_ref = refs[4 + 2 * num_layers]
        logits_ref = refs[n_in]
        h_out_ref = refs[n_in + 1]
        c_out_ref = refs[n_in + 2]
        h_last = refs[n_in + 3]          # VMEM scratch, persists across grid

        H = hidden
        j = pl.program_id(0)

        # ---- multi-layer LSTM cell: run once (grid step 0), states stay in VMEM.
        # TODO(synk): for large H / many layers, stream per-layer LSTM weights
        # over a leading grid axis so layer l+1's weight DMA overlaps layer l's
        # gate matmul (required on v7x's 64 MiB VMEM when H ~ 1k+).
        @pl.when(j == 0)
        def _run_lstm():
            x = x_ref[...].astype(compute_dtype)              # (B, emb)
            for l in range(num_layers):
                h_prev = h0_ref[l].astype(compute_dtype)      # (B, H)
                c_prev = c0_ref[l].astype(jnp.float32)        # (B, H) f32
                xh = jnp.concatenate([x, h_prev], axis=-1)    # (B, in_l + H)
                # Fused input + recurrent contraction -> (B, 4H), f32 accum.
                gates = jnp.dot(xh, w_refs[l][...],
                                preferred_element_type=jnp.float32)
                gates = gates + b_refs[l][...]                # b_ih + b_hh
                # PyTorch gate order: i, f, g, o
                i_g = _sigmoid(gates[:, 0 * H:1 * H])
                f_g = _sigmoid(gates[:, 1 * H:2 * H])
                g_g = jnp.tanh(gates[:, 2 * H:3 * H])
                o_g = _sigmoid(gates[:, 3 * H:4 * H])
                c_new = f_g * c_prev + i_g * g_g              # f32
                h_new = o_g * jnp.tanh(c_new)                 # f32
                h_out_ref[l] = h_new.astype(h_out_ref.dtype)
                c_out_ref[l] = c_new.astype(c_out_ref.dtype)
                # inter-layer dropout is identity at inference
                x = h_new.astype(compute_dtype)
            h_last[...] = x                                   # last layer's h

        # ---- fc projection: one lane-dense output tile per grid step, weight
        #      tiles streamed via BlockSpec, h read from resident VMEM scratch.
        # TODO(synk): for vocab-scale output_size on v7x, split the projection
        # into a second pallas_call with dimension_semantics=("parallel",) so
        # both TensorCores share the fc tiles (h_out/c_out written here).
        logits = jnp.dot(h_last[...], wfc_ref[...],
                         preferred_element_type=jnp.float32)
        logits_ref[...] = (logits + bfc_ref[...]).astype(logits_ref.dtype)

    return kernel


def prepare_decoder_params(params, *, compute_dtype=jnp.bfloat16, tile_n=None,
                           fc_tile_bytes=2 * 1024 * 1024):
    """One-time weight preprocessing. Call ONCE before the decode loop.

    Performs the transpose / concat / dtype-cast / pad of all weights so the
    per-token decoder_forward is a pure weight-read workload.

    params:
        "embedding": (vocab, emb)
        "w_ih": [(4H, emb), (4H, H), ...]   "w_hh": [(4H, H), ...]
        "b_ih": [(4H,), ...]                "b_hh": [(4H,), ...]
        "w_fc": (out, H)                    "b_fc": (out,)
    """
    w_ih, w_hh = params["w_ih"], params["w_hh"]
    b_ih, b_hh = params["b_ih"], params["b_hh"]
    w_fc, b_fc = params["w_fc"], params["b_fc"]

    num_layers = len(w_ih)
    H = int(w_hh[0].shape[-1])
    emb = int(w_ih[0].shape[-1])
    out_size = int(w_fc.shape[0])
    dsize = jnp.dtype(compute_dtype).itemsize

    if tile_n is None:
        # Largest lane-dense fc tile whose (H, tile_n) weight slab stays under
        # fc_tile_bytes per pipeline buffer; small out_size collapses the grid
        # to a single step (saves ~0.35 us per grid step + gives wide stores).
        cap = max(128, (fc_tile_bytes // (H * dsize)) // 128 * 128)
        tile_n = int(min(_round_up(out_size, 128), cap))
    out_pad = _round_up(out_size, tile_n)

    # Fused [W_ih^T ; W_hh^T] -> (in_l + H, 4H): one MXU contraction per layer.
    w_fused = tuple(
        jnp.concatenate([w_ih[l].T, w_hh[l].T], axis=0).astype(compute_dtype)
        for l in range(num_layers))
    b_fused = tuple(
        (b_ih[l] + b_hh[l]).reshape(1, 4 * H).astype(jnp.float32)
        for l in range(num_layers))
    wfc_t = jnp.pad(w_fc.T.astype(compute_dtype),
                    ((0, 0), (0, out_pad - out_size)))
    bfc = jnp.pad(b_fc.astype(jnp.float32),
                  (0, out_pad - out_size)).reshape(1, out_pad)

    return {
        "embedding": params["embedding"],
        "w_fused": w_fused,
        "b_fused": b_fused,
        "wfc_t": wfc_t,
        "bfc": bfc,
        "compute_dtype": compute_dtype,
        "num_layers": num_layers,
        "hidden_size": H,
        "embedding_size": emb,
        "output_size": out_size,
        "out_pad": int(out_pad),
        "tile_n": int(tile_n),
    }


def decoder_forward(token_ids, hidden, cell, prepared, *,
                    single_buffer_invariant=False):
    """Pallas forward pass of Decoder (inference; dropout == identity).

    token_ids: (1, batch) or (batch,) int32
    hidden, cell: (num_layers, batch, hidden_size) float32
    prepared: output of prepare_decoder_params()
    returns (predictions (batch, out), hidden, cell)
    """
    compute_dtype = prepared["compute_dtype"]
    num_layers = prepared["num_layers"]
    H = prepared["hidden_size"]
    emb = prepared["embedding_size"]
    out_size = prepared["output_size"]
    out_pad = prepared["out_pad"]
    tile_n = prepared["tile_n"]
    w_fused = prepared["w_fused"]
    b_fused = prepared["b_fused"]
    wfc_t = prepared["wfc_t"]
    bfc = prepared["bfc"]
    dsize = jnp.dtype(compute_dtype).itemsize

    tokens = token_ids.reshape(-1)          # squeeze the seq_len == 1 dim
    batch = tokens.shape[0]
    batch_pad = _round_up(max(batch, 1), 8)      # f32 sublane multiple

    # Embedding gather (+ identity dropout) in XLA glue; gathered rows land
    # directly in the VMEM block consumed by layer 0.
    # TODO(synk): move the gather in-kernel via PrefetchScalarGridSpec +
    # pl.Element row-gather so it overlaps the LSTM weight prefetch.
    x = jnp.take(prepared["embedding"], tokens, axis=0).astype(compute_dtype)
    x_p = jnp.pad(x, ((0, batch_pad - batch), (0, 0)))
    h0_p = jnp.pad(hidden.astype(jnp.float32),
                   ((0, 0), (0, batch_pad - batch), (0, 0)))
    c0_p = jnp.pad(cell.astype(jnp.float32),
                   ((0, 0), (0, batch_pad - batch), (0, 0)))

    grid = (out_pad // tile_n,)

    # Optional single-buffering of grid-invariant blocks (they are DMA'd once);
    # mainly useful on v7x's 64 MiB VMEM with large H / many layers.
    inv_kw = {"pipeline_mode": pl.Buffered(1)} if single_buffer_invariant else {}

    in_specs = [
        pl.BlockSpec((batch_pad, emb), lambda j: (0, 0), **inv_kw),               # x
        pl.BlockSpec((num_layers, batch_pad, H), lambda j: (0, 0, 0), **inv_kw),  # h0
        pl.BlockSpec((num_layers, batch_pad, H), lambda j: (0, 0, 0), **inv_kw),  # c0
    ]
    for l in range(num_layers):                                                   # W_l
        in_specs.append(pl.BlockSpec(tuple(w_fused[l].shape),
                                     lambda j: (0, 0), **inv_kw))
    for l in range(num_layers):                                                   # b_l
        in_specs.append(pl.BlockSpec((1, 4 * H), lambda j: (0, 0), **inv_kw))
    in_specs.append(pl.BlockSpec((H, tile_n), lambda j: (0, j)))                  # Wfc^T (streamed)
    in_specs.append(pl.BlockSpec((1, tile_n), lambda j: (0, j)))                  # bfc  (streamed)

    out_specs = (
        pl.BlockSpec((batch_pad, tile_n), lambda j: (0, j)),            # logits tile
        pl.BlockSpec((num_layers, batch_pad, H), lambda j: (0, 0, 0)),  # h_out
        pl.BlockSpec((num_layers, batch_pad, H), lambda j: (0, 0, 0)),  # c_out
    )
    out_shape = (
        jax.ShapeDtypeStruct((batch_pad, out_pad), jnp.float32),
        jax.ShapeDtypeStruct((num_layers, batch_pad, H), jnp.float32),
        jax.ShapeDtypeStruct((num_layers, batch_pad, H), jnp.float32),
    )

    # ---- explicit VMEM budget: resident blocks + double-buffered fc tiles.
    f32b = 4
    inv_buf = 1 if single_buffer_invariant else 2
    invariant_bytes = (
        batch_pad * emb * dsize                              # x
        + 2 * num_layers * batch_pad * H * f32b              # h0, c0
        + sum(int(w.size) for w in w_fused) * dsize          # fused LSTM weights
        + num_layers * 4 * H * f32b                          # fused biases
    )
    state_out_bytes = 2 * (2 * num_layers * batch_pad * H * f32b)   # h_out, c_out
    streamed_bytes = 2 * (H * tile_n * dsize                        # Wfc tile
                          + tile_n * f32b                           # bfc tile
                          + batch_pad * tile_n * f32b)              # logits tile
    scratch_bytes = batch_pad * H * dsize                           # h_last
    vmem_est = (inv_buf * invariant_bytes + state_out_bytes
                + streamed_bytes + scratch_bytes)
    vmem_limit = int(max(vmem_est * 1.5 + (2 << 20), 16 * 1024 * 1024))

    kernel = _make_decoder_kernel(num_layers, H, compute_dtype)

    logits, h_out, c_out = pl.pallas_call(
        kernel,
        grid=grid,
        in_specs=in_specs,
        out_specs=out_specs,
        out_shape=out_shape,
        scratch_shapes=[pltpu.VMEM((batch_pad, H), compute_dtype)],      # h_last
        # Update the recurrent state in place across an autoregressive loop.
        input_output_aliases={1: 1, 2: 2},                   # h0->h_out, c0->c_out
        compiler_params=pltpu.CompilerParams(
            # LSTM state lives in VMEM scratch across the fc-tile axis, so the
            # axis must run sequentially on one core.
            dimension_semantics=("arbitrary",),
            vmem_limit_bytes=vmem_limit,
        ),
    )(x_p, h0_p, c0_p, *w_fused, *b_fused, wfc_t, bfc)

    predictions = logits[:batch, :out_size]
    return predictions, h_out[:, :batch, :], c_out[:, :batch, :]


# ----------------------------- pure-JAX reference ---------------------------
def decoder_forward_reference(token_ids, hidden, cell, params):
    w_ih, w_hh = params["w_ih"], params["w_hh"]
    b_ih, b_hh = params["b_ih"], params["b_hh"]
    w_fc, b_fc = params["w_fc"], params["b_fc"]
    num_layers = len(w_ih)
    H = w_hh[0].shape[-1]

    tokens = token_ids.reshape(-1)
    x = jnp.take(params["embedding"], tokens, axis=0)
    hs, cs = [], []
    for l in range(num_layers):
        gates = x @ w_ih[l].T + hidden[l] @ w_hh[l].T + b_ih[l] + b_hh[l]
        i = jax.nn.sigmoid(gates[:, 0 * H:1 * H])
        f = jax.nn.sigmoid(gates[:, 1 * H:2 * H])
        g = jnp.tanh(gates[:, 2 * H:3 * H])
        o = jax.nn.sigmoid(gates[:, 3 * H:4 * H])
        c_new = f * cell[l] + i * g
        h_new = o * jnp.tanh(c_new)
        hs.append(h_new)
        cs.append(c_new)
        x = h_new
    preds = x @ w_fc.T + b_fc
    return preds, jnp.stack(hs), jnp.stack(cs)


if __name__ == "__main__":
    key = jax.random.PRNGKey(0)

    vocab_size = 100          # Decoder input_size
    embedding_size = 128
    hidden_size = 128
    output_size = 300         # pads to 384 lanes
    num_layers = 2
    batch = 4

    keys = iter(jax.random.split(key, 32))
    scale = 1.0 / float(jnp.sqrt(jnp.float32(hidden_size)))

    def uniform(shape):
        return jax.random.uniform(next(keys), shape, jnp.float32, -scale, scale)

    params = {
        "embedding": 0.1 * jax.random.normal(
            next(keys), (vocab_size, embedding_size), jnp.float32),
        "w_ih": [], "w_hh": [], "b_ih": [], "b_hh": [],
        "w_fc": uniform((output_size, hidden_size)),
        "b_fc": uniform((output_size,)),
    }
    for l in range(num_layers):
        in_l = embedding_size if l == 0 else hidden_size
        params["w_ih"].append(uniform((4 * hidden_size, in_l)))
        params["w_hh"].append(uniform((4 * hidden_size, hidden_size)))
        params["b_ih"].append(uniform((4 * hidden_size,)))
        params["b_hh"].append(uniform((4 * hidden_size,)))

    token_ids = jax.random.randint(next(keys), (1, batch), 0, vocab_size,
                                   dtype=jnp.int32)
    hidden = 0.5 * jax.random.normal(
        next(keys), (num_layers, batch, hidden_size), jnp.float32)
    cell = 0.5 * jax.random.normal(
        next(keys), (num_layers, batch, hidden_size), jnp.float32)

    ref_p, ref_h, ref_c = decoder_forward_reference(token_ids, hidden, cell,
                                                    params)

    # 1) f32 weights, auto tile_n (grid collapses to 1 step) -> tight check.
    prep_f32 = prepare_decoder_params(params, compute_dtype=jnp.float32)
    preds, h1, c1 = decoder_forward(token_ids, hidden, cell, prep_f32)
    jax.block_until_ready((preds, h1, c1))

    assert preds.shape == (batch, output_size)
    assert h1.shape == (num_layers, batch, hidden_size)
    assert c1.shape == (num_layers, batch, hidden_size)
    assert float(jnp.max(jnp.abs(preds - ref_p))) < 1e-3
    assert float(jnp.max(jnp.abs(h1 - ref_h))) < 1e-3
    assert float(jnp.max(jnp.abs(c1 - ref_c))) < 1e-3

    # 2) f32 weights, forced tile_n=128 -> exercises the streamed multi-tile
    #    fc path (grid of 3 steps); still a tight check.
    prep_f32_t = prepare_decoder_params(params, compute_dtype=jnp.float32,
                                        tile_n=128)
    preds_t, h_t, c_t = decoder_forward(token_ids, hidden, cell, prep_f32_t)
    jax.block_until_ready((preds_t, h_t, c_t))
    assert float(jnp.max(jnp.abs(preds_t - ref_p))) < 1e-3
    assert float(jnp.max(jnp.abs(h_t - ref_h))) < 1e-3
    assert float(jnp.max(jnp.abs(c_t - ref_c))) < 1e-3

    # 3) default bf16 weights/activations (f32 gate accumulation + c-state);
    #    loose tolerance.
    prep_bf16 = prepare_decoder_params(params)     # compute_dtype=bf16 default
    preds_b, h_b, c_b = decoder_forward(token_ids, hidden, cell, prep_bf16)
    jax.block_until_ready((preds_b, h_b, c_b))
    assert float(jnp.max(jnp.abs(preds_b - ref_p))) < 0.15
    assert float(jnp.max(jnp.abs(h_b - ref_h))) < 0.15

    print("KERNEL_OK")
</pallas_src>

<mosaic_0001>
module attributes {stable_mosaic.version = 11 : i64} {
  func.func @kernel(%arg0: i32, %arg1: memref<8x128xf32, #tpu.memory_space<vmem>>, %arg2: memref<2x8x128xf32, #tpu.memory_space<vmem>>, %arg3: memref<2x8x128xf32, #tpu.memory_space<vmem>>, %arg4: memref<256x512xf32, #tpu.memory_space<vmem>>, %arg5: memref<256x512xf32, #tpu.memory_space<vmem>>, %arg6: memref<1x512xf32, #tpu.memory_space<vmem>>, %arg7: memref<1x512xf32, #tpu.memory_space<vmem>>, %arg8: memref<128x384xf32, #tpu.memory_space<vmem>>, %arg9: memref<1x384xf32, #tpu.memory_space<vmem>>, %arg10: memref<8x384xf32, #tpu.memory_space<vmem>>, %arg11: memref<2x8x128xf32, #tpu.memory_space<vmem>>, %arg12: memref<2x8x128xf32, #tpu.memory_space<vmem>>, %arg13: memref<8x128xf32, #tpu.memory_space<vmem>>) attributes {dimension_semantics = [#tpu.dimension_semantics<arbitrary>], iteration_bounds = array<i64: 1>, scalar_prefetch = 0 : i64, scratch_operands = 1 : i64, tpu.core_type = #tpu.core_type<tc>, window_params = [{pipeline_mode = #tpu.pipeline_mode<synchronous>, transform_indices = @transform_0, window_bounds = array<i64: 8, 128>}, {pipeline_mode = #tpu.pipeline_mode<synchronous>, transform_indices = @transform_1, window_bounds = array<i64: 2, 8, 128>}, {pipeline_mode = #tpu.pipeline_mode<synchronous>, transform_indices = @transform_2, window_bounds = array<i64: 2, 8, 128>}, {pipeline_mode = #tpu.pipeline_mode<synchronous>, transform_indices = @transform_3, window_bounds = array<i64: 256, 512>}, {pipeline_mode = #tpu.pipeline_mode<synchronous>, transform_indices = @transform_4, window_bounds = array<i64: 256, 512>}, {pipeline_mode = #tpu.pipeline_mode<synchronous>, transform_indices = @transform_5, window_bounds = array<i64: 1, 512>}, {pipeline_mode = #tpu.pipeline_mode<synchronous>, transform_indices = @transform_6, window_bounds = array<i64: 1, 512>}, {transform_indices = @transform_7, window_bounds = array<i64: 128, 384>}, {transform_indices = @transform_8, window_bounds = array<i64: 1, 384>}, {transform_indices = @transform_9, window_bounds = array<i64: 8, 384>}, {pipeline_mode = #tpu.pipeline_mode<synchronous>, transform_indices = @transform_10, window_bounds = array<i64: 2, 8, 128>}, {pipeline_mode = #tpu.pipeline_mode<synchronous>, transform_indices = @transform_11, window_bounds = array<i64: 2, 8, 128>}]} {
    %c0_i32 = arith.constant 0 : i32
    %0 = arith.cmpi eq, %arg0, %c0_i32 : i32
    %1 = arith.extui %0 : i1 to i32
    %c0_i32_0 = arith.constant 0 : i32
    %2 = arith.cmpi ne, %1, %c0_i32_0 : i32
    scf.if %2 {
      %c0_8 = arith.constant 0 : index
      %c0_9 = arith.constant 0 : index
      %10 = vector.load %arg1[%c0_8, %c0_9] : memref<8x128xf32, #tpu.memory_space<vmem>>, vector<8x128xf32>
      %c0_10 = arith.constant 0 : index
      %c0_11 = arith.constant 0 : index
      %c0_12 = arith.constant 0 : index
      %11 = vector.load %arg2[%c0_10, %c0_11, %c0_12] : memref<2x8x128xf32, #tpu.memory_space<vmem>>, vector<1x8x128xf32>
      %12 = vector.shape_cast %11 : vector<1x8x128xf32> to vector<8x128xf32>
      %c0_13 = arith.constant 0 : index
      %c0_14 = arith.constant 0 : index
      %c0_15 = arith.constant 0 : index
      %13 = vector.load %arg3[%c0_13, %c0_14, %c0_15] : memref<2x8x128xf32, #tpu.memory_space<vmem>>, vector<1x8x128xf32>
      %14 = vector.shape_cast %13 : vector<1x8x128xf32> to vector<8x128xf32>
      %15 = tpu.concatenate %10, %12 in 1 : vector<8x128xf32>, vector<8x128xf32> -> vector<8x256xf32>
      %c0_16 = arith.constant 0 : index
      %c0_17 = arith.constant 0 : index
      %16 = vector.load %arg4[%c0_16, %c0_17] : memref<256x512xf32, #tpu.memory_space<vmem>>, vector<256x512xf32>
      %cst_18 = arith.constant dense<0.000000e+00> : vector<8x512xf32>
      %17 = tpu.matmul %15, %16, %cst_18 {dimension_numbers = #tpu.dot_dimension_numbers<[1], [0], [0], [1], [0, 0, 1, 1], [], []>} : vector<8x256xf32>, vector<256x512xf32>, vector<8x512xf32> -> vector<8x512xf32>
      %c0_19 = arith.constant 0 : index
      %c0_20 = arith.constant 0 : index
      %18 = vector.load %arg6[%c0_19, %c0_20] : memref<1x512xf32, #tpu.memory_space<vmem>>, vector<1x512xf32>
      %19 = vector.broadcast %18 : vector<1x512xf32> to vector<8x512xf32>
      %20 = arith.addf %17, %19 : vector<8x512xf32>
      %21 = vector.extract_strided_slice %20 {offsets = [0, 0], sizes = [8, 128], strides = [1, 1]} : vector<8x512xf32> to vector<8x128xf32>
      %cst_21 = arith.constant 5.000000e-01 : f32
      %22 = vector.broadcast %cst_21 : f32 to vector<8x128xf32>
      %23 = arith.mulf %22, %21 : vector<8x128xf32>
      %24 = math.tanh %23 : vector<8x128xf32>
      %cst_22 = arith.constant 5.000000e-01 : f32
      %25 = vector.broadcast %cst_22 : f32 to vector<8x128xf32>
      %26 = arith.mulf %25, %24 : vector<8x128xf32>
      %cst_23 = arith.constant 5.000000e-01 : f32
      %27 = vector.broadcast %cst_23 : f32 to vector<8x128xf32>
      %28 = arith.addf %26, %27 : vector<8x128xf32>
      %29 = vector.extract_strided_slice %20 {offsets = [0, 128], sizes = [8, 128], strides = [1, 1]} : vector<8x512xf32> to vector<8x128xf32>
      %cst_24 = arith.constant 5.000000e-01 : f32
      %30 = vector.broadcast %cst_24 : f32 to vector<8x128xf32>
      %31 = arith.mulf %30, %29 : vector<8x128xf32>
      %32 = math.tanh %31 : vector<8x128xf32>
      %cst_25 = arith.constant 5.000000e-01 : f32
      %33 = vector.broadcast %cst_25 : f32 to vector<8x128xf32>
      %34 = arith.mulf %33, %32 : vector<8x128xf32>
      %cst_26 = arith.constant 5.000000e-01 : f32
      %35 = vector.broadcast %cst_26 : f32 to vector<8x128xf32>
      %36 = arith.addf %34, %35 : vector<8x128xf32>
      %37 = vector.extract_strided_slice %20 {offsets = [0, 256], sizes = [8, 128], strides = [1, 1]} : vector<8x512xf32> to vector<8x128xf32>
      %38 = math.tanh %37 : vector<8x128xf32>
      %39 = vector.extract_strided_slice %20 {offsets = [0, 384], sizes = [8, 128], strides = [1, 1]} : vector<8x512xf32> to vector<8x128xf32>
      %cst_27 = arith.constant 5.000000e-01 : f32
      %40 = vector.broadcast %cst_27 : f32 to vector<8x128xf32>
      %41 = arith.mulf %40, %39 : vector<8x128xf32>
      %42 = math.tanh %41 : vector<8x128xf32>
      %cst_28 = arith.constant 5.000000e-01 : f32
      %43 = vector.broadcast %cst_28 : f32 to vector<8x128xf32>
      %44 = arith.mulf %43, %42 : vector<8x128xf32>
      %cst_29 = arith.constant 5.000000e-01 : f32
      %45 = vector.broadcast %cst_29 : f32 to vector<8x128xf32>
      %46 = arith.addf %44, %45 : vector<8x128xf32>
      %47 = arith.mulf %36, %14 : vector<8x128xf32>
      %48 = arith.mulf %28, %38 : vector<8x128xf32>
      %49 = arith.addf %47, %48 : vector<8x128xf32>
      %50 = math.tanh %49 : vector<8x128xf32>
      %51 = arith.mulf %46, %50 : vector<8x128xf32>
      %c0_30 = arith.constant 0 : index
      %c0_31 = arith.constant 0 : index
      %c0_32 = arith.constant 0 : index
      %52 = vector.load %arg11[%c0_30, %c0_31, %c0_32] : memref<2x8x128xf32, #tpu.memory_space<vmem>>, vector<1x8x128xf32>
      %53 = vector.shape_cast %52 : vector<1x8x128xf32> to vector<8x128xf32>
      %54 = vector.shape_cast %51 : vector<8x128xf32> to vector<1x8x128xf32>
      tpu.vector_store %arg11[%c0_30, %c0_31, %c0_32], %54 {strides = array<i32>} : memref<2x8x128xf32, #tpu.memory_space<vmem>>, vector<1x8x128xf32>,
      %c0_33 = arith.constant 0 : index
      %c0_34 = arith.constant 0 : index
      %c0_35 = arith.constant 0 : index
      %55 = vector.load %arg12[%c0_33, %c0_34, %c0_35] : memref<2x8x128xf32, #tpu.memory_space<vmem>>, vector<1x8x128xf32>
      %56 = vector.shape_cast %55 : vector<1x8x128xf32> to vector<8x128xf32>
      %57 = vector.shape_cast %49 : vector<8x128xf32> to vector<1x8x128xf32>
      tpu.vector_store %arg12[%c0_33, %c0_34, %c0_35], %57 {strides = array<i32>} : memref<2x8x128xf32, #tpu.memory_space<vmem>>, vector<1x8x128xf32>,
      %c1 = arith.constant 1 : index
      %c0_36 = arith.constant 0 : index
      %c0_37 = arith.constant 0 : index
      %58 = vector.load %arg2[%c1, %c0_36, %c0_37] : memref<2x8x128xf32, #tpu.memory_space<vmem>>, vector<1x8x128xf32>
      %59 = vector.shape_cast %58 : vector<1x8x128xf32> to vector<8x128xf32>
      %c1_38 = arith.constant 1 : index
      %c0_39 = arith.constant 0 : index
      %c0_40 = arith.constant 0 : index
      %60 = vector.load %arg3[%c1_38, %c0_39, %c0_40] : memref<2x8x128xf32, #tpu.memory_space<vmem>>, vector<1x8x128xf32>
      %61 = vector.shape_cast %60 : vector<1x8x128xf32> to vector<8x128xf32>
      %62 = tpu.concatenate %51, %59 in 1 : vector<8x128xf32>, vector<8x128xf32> -> vector<8x256xf32>
      %c0_41 = arith.constant 0 : index
      %c0_42 = arith.constant 0 : index
      %63 = vector.load %arg5[%c0_41, %c0_42] : memref<256x512xf32, #tpu.memory_space<vmem>>, vector<256x512xf32>
      %cst_43 = arith.constant dense<0.000000e+00> : vector<8x512xf32>
      %64 = tpu.matmul %62, %63, %cst_43 {dimension_numbers = #tpu.dot_dimension_numbers<[1], [0], [0], [1], [0, 0, 1, 1], [], []>} : vector<8x256xf32>, vector<256x512xf32>, vector<8x512xf32> -> vector<8x512xf32>
      %c0_44 = arith.constant 0 : index
      %c0_45 = arith.constant 0 : index
      %65 = vector.load %arg7[%c0_44, %c0_45] : memref<1x512xf32, #tpu.memory_space<vmem>>, vector<1x512xf32>
      %66 = vector.broadcast %65 : vector<1x512xf32> to vector<8x512xf32>
      %67 = arith.addf %64, %66 : vector<8x512xf32>
      %68 = vector.extract_strided_slice %67 {offsets = [0, 0], sizes = [8, 128], strides = [1, 1]} : vector<8x512xf32> to vector<8x128xf32>
      %cst_46 = arith.constant 5.000000e-01 : f32
      %69 = vector.broadcast %cst_46 : f32 to vector<8x128xf32>
      %70 = arith.mulf %69, %68 : vector<8x128xf32>
      %71 = math.tanh %70 : vector<8x128xf32>
      %cst_47 = arith.constant 5.000000e-01 : f32
      %72 = vector.broadcast %cst_47 : f32 to vector<8x128xf32>
      %73 = arith.mulf %72, %71 : vector<8x128xf32>
      %cst_48 = arith.constant 5.000000e-01 : f32
      %74 = vector.broadcast %cst_48 : f32 to vector<8x128xf32>
      %75 = arith.addf %73, %74 : vector<8x128xf32>
      %76 = vector.extract_strided_slice %67 {offsets = [0, 128], sizes = [8, 128], strides = [1, 1]} : vector<8x512xf32> to vector<8x128xf32>
      %cst_49 = arith.constant 5.000000e-01 : f32
      %77 = vector.broadcast %cst_49 : f32 to vector<8x128xf32>
      %78 = arith.mulf %77, %76 : vector<8x128xf32>
      %79 = math.tanh %78 : vector<8x128xf32>
      %cst_50 = arith.constant 5.000000e-01 : f32
      %80 = vector.broadcast %cst_50 : f32 to vector<8x128xf32>
      %81 = arith.mulf %80, %79 : vector<8x128xf32>
      %cst_51 = arith.constant 5.000000e-01 : f32
      %82 = vector.broadcast %cst_51 : f32 to vector<8x128xf32>
      %83 = arith.addf %81, %82 : vector<8x128xf32>
      %84 = vector.extract_strided_slice %67 {offsets = [0, 256], sizes = [8, 128], strides = [1, 1]} : vector<8x512xf32> to vector<8x128xf32>
      %85 = math.tanh %84 : vector<8x128xf32>
      %86 = vector.extract_strided_slice %67 {offsets = [0, 384], sizes = [8, 128], strides = [1, 1]} : vector<8x512xf32> to vector<8x128xf32>
      %cst_52 = arith.constant 5.000000e-01 : f32
      %87 = vector.broadcast %cst_52 : f32 to vector<8x128xf32>
      %88 = arith.mulf %87, %86 : vector<8x128xf32>
      %89 = math.tanh %88 : vector<8x128xf32>
      %cst_53 = arith.constant 5.000000e-01 : f32
      %90 = vector.broadcast %cst_53 : f32 to vector<8x128xf32>
      %91 = arith.mulf %90, %89 : vector<8x128xf32>
      %cst_54 = arith.constant 5.000000e-01 : f32
      %92 = vector.broadcast %cst_54 : f32 to vector<8x128xf32>
      %93 = arith.addf %91, %92 : vector<8x128xf32>
      %94 = arith.mulf %83, %61 : vector<8x128xf32>
      %95 = arith.mulf %75, %85 : vector<8x128xf32>
      %96 = arith.addf %94, %95 : vector<8x128xf32>
      %97 = math.tanh %96 : vector<8x128xf32>
      %98 = arith.mulf %93, %97 : vector<8x128xf32>
      %c1_55 = arith.constant 1 : index
      %c0_56 = arith.constant 0 : index
      %c0_57 = arith.constant 0 : index
      %99 = vector.load %arg11[%c1_55, %c0_56, %c0_57] : memref<2x8x128xf32, #tpu.memory_space<vmem>>, vector<1x8x128xf32>
      %100 = vector.shape_cast %99 : vector<1x8x128xf32> to vector<8x128xf32>
      %101 = vector.shape_cast %98 : vector<8x128xf32> to vector<1x8x128xf32>
      tpu.vector_store %arg11[%c1_55, %c0_56, %c0_57], %101 {strides = array<i32>} : memref<2x8x128xf32, #tpu.memory_space<vmem>>, vector<1x8x128xf32>,
      %c1_58 = arith.constant 1 : index
      %c0_59 = arith.constant 0 : index
      %c0_60 = arith.constant 0 : index
      %102 = vector.load %arg12[%c1_58, %c0_59, %c0_60] : memref<2x8x128xf32, #tpu.memory_space<vmem>>, vector<1x8x128xf32>
      %103 = vector.shape_cast %102 : vector<1x8x128xf32> to vector<8x128xf32>
      %104 = vector.shape_cast %96 : vector<8x128xf32> to vector<1x8x128xf32>
      tpu.vector_store %arg12[%c1_58, %c0_59, %c0_60], %104 {strides = array<i32>} : memref<2x8x128xf32, #tpu.memory_space<vmem>>, vector<1x8x128xf32>,
      %c0_61 = arith.constant 0 : index
      %c0_62 = arith.constant 0 : index
      %105 = vector.load %arg13[%c0_61, %c0_62] : memref<8x128xf32, #tpu.memory_space<vmem>>, vector<8x128xf32>
      tpu.vector_store %arg13[%c0_61, %c0_62], %98 {strides = array<i32>} : memref<8x128xf32, #tpu.memory_space<vmem>>, vector<8x128xf32>,
    } else {
    }
    %c0 = arith.constant 0 : index
    %c0_1 = arith.constant 0 : index
    %3 = vector.load %arg13[%c0, %c0_1] : memref<8x128xf32, #tpu.memory_space<vmem>>, vector<8x128xf32>
    %c0_2 = arith.constant 0 : index
    %c0_3 = arith.constant 0 : index
    %4 = vector.load %arg8[%c0_2, %c0_3] : memref<128x384xf32, #tpu.memory_space<vmem>>, vector<128x384xf32>
    %cst = arith.constant dense<0.000000e+00> : vector<8x384xf32>
    %5 = tpu.matmul %3, %4, %cst {dimension_numbers = #tpu.dot_dimension_numbers<[1], [0], [0], [1], [0, 0, 1, 1], [], []>} : vector<8x128xf32>, vector<128x384xf32>, vector<8x384xf32> -> vector<8x384xf32>
    %c0_4 = arith.constant 0 : index
    %c0_5 = arith.constant 0 : index
    %6 = vector.load %arg9[%c0_4, %c0_5] : memref<1x384xf32, #tpu.memory_space<vmem>>, vector<1x384xf32>
    %7 = vector.broadcast %6 : vector<1x384xf32> to vector<8x384xf32>
    %8 = arith.addf %5, %7 : vector<8x384xf32>
    %c0_6 = arith.constant 0 : index
    %c0_7 = arith.constant 0 : index
    %9 = vector.load %arg10[%c0_6, %c0_7] : memref<8x384xf32, #tpu.memory_space<vmem>>, vector<8x384xf32>
    tpu.vector_store %arg10[%c0_6, %c0_7], %8 {strides = array<i32>} : memref<8x384xf32, #tpu.memory_space<vmem>>, vector<8x384xf32>,
    return
  }
  func.func @transform_0(%arg0: i32) -> (i32, i32) {
    %c0_i32 = arith.constant 0 : i32
    %c0_i32_0 = arith.constant 0 : i32
    %c0_i32_1 = arith.constant 0 : i32
    return %c0_i32, %c0_i32_0 : i32, i32
  }
  func.func @transform_1(%arg0: i32) -> (i32, i32, i32) {
    %c0_i32 = arith.constant 0 : i32
    %c0_i32_0 = arith.constant 0 : i32
    %c0_i32_1 = arith.constant 0 : i32
    %c0_i32_2 = arith.constant 0 : i32
    return %c0_i32, %c0_i32_0, %c0_i32_1 : i32, i32, i32
  }
  func.func @transform_2(%arg0: i32) -> (i32, i32, i32) {
    %c0_i32 = arith.constant 0 : i32
    %c0_i32_0 = arith.constant 0 : i32
    %c0_i32_1 = arith.constant 0 : i32
    %c0_i32_2 = arith.constant 0 : i32
    return %c0_i32, %c0_i32_0, %c0_i32_1 : i32, i32, i32
  }
  func.func @transform_3(%arg0: i32) -> (i32, i32) {
    %c0_i32 = arith.constant 0 : i32
    %c0_i32_0 = arith.constant 0 : i32
    %c0_i32_1 = arith.constant 0 : i32
    return %c0_i32, %c0_i32_0 : i32, i32
  }
  func.func @transform_4(%arg0: i32) -> (i32, i32) {
    %c0_i32 = arith.constant 0 : i32
    %c0_i32_0 = arith.constant 0 : i32
    %c0_i32_1 = arith.constant 0 : i32
    return %c0_i32, %c0_i32_0 : i32, i32
  }
  func.func @transform_5(%arg0: i32) -> (i32, i32) {
    %c0_i32 = arith.constant 0 : i32
    %c0_i32_0 = arith.constant 0 : i32
    %c0_i32_1 = arith.constant 0 : i32
    return %c0_i32, %c0_i32_0 : i32, i32
  }
  func.func @transform_6(%arg0: i32) -> (i32, i32) {
    %c0_i32 = arith.constant 0 : i32
    %c0_i32_0 = arith.constant 0 : i32
    %c0_i32_1 = arith.constant 0 : i32
    return %c0_i32, %c0_i32_0 : i32, i32
  }
  func.func @transform_7(%arg0: i32) -> (i32, i32) {
    %c0_i32 = arith.constant 0 : i32
    %c0_i32_0 = arith.constant 0 : i32
    return %c0_i32, %arg0 : i32, i32
  }
  func.func @transform_8(%arg0: i32) -> (i32, i32) {
    %c0_i32 = arith.constant 0 : i32
    %c0_i32_0 = arith.constant 0 : i32
    return %c0_i32, %arg0 : i32, i32
  }
  func.func @transform_9(%arg0: i32) -> (i32, i32) {
    %c0_i32 = arith.constant 0 : i32
    %c0_i32_0 = arith.constant 0 : i32
    return %c0_i32, %arg0 : i32, i32
  }
  func.func @transform_10(%arg0: i32) -> (i32, i32, i32) {
    %c0_i32 = arith.constant 0 : i32
    %c0_i32_0 = arith.constant 0 : i32
    %c0_i32_1 = arith.constant 0 : i32
    %c0_i32_2 = arith.constant 0 : i32
    return %c0_i32, %c0_i32_0, %c0_i32_1 : i32, i32, i32
  }
  func.func @transform_11(%arg0: i32) -> (i32, i32, i32) {
    %c0_i32 = arith.constant 0 : i32
    %c0_i32_0 = arith.constant 0 : i32
    %c0_i32_1 = arith.constant 0 : i32
    %c0_i32_2 = arith.constant 0 : i32
    return %c0_i32, %c0_i32_0, %c0_i32_1 : i32, i32, i32
  }
}

</mosaic_0001>

<bundles_post_ra>
// kernel: tpu_custom_call.1
= control target key start
LH: loop header
LB: loop body
LE: loop exit
PB: predicated region body
PF: predicated region fallthrough
CT: control target
= control target key end

     0   :  { %17 = vsyncpa [#allocation4], 0  ;;  %s1426_s0 = inlined_call_operand.vmem [shape: f32[8,128], index: 0, kind: input, shape index: {}]   ;;  %s1427_s1 = inlined_call_operand.hbm [shape: f32[2,8,128], index: 1, kind: input, shape index: {}, may-alias: {1,10}]   ;;  %s1428_s2 = inlined_call_operand.hbm [shape: f32[2,8,128], index: 2, kind: input, shape index: {}, may-alias: {2,11}]   ;;  %s1429_s3 = inlined_call_operand.hbm [shape: f32[256,512], index: 3, kind: input, shape index: {}]   ;;  %s1430_s4 = inlined_call_operand.hbm [shape: f32[256,512], index: 4, kind: input, shape index: {}]   ;;  %s1431_s5 = inlined_call_operand.vmem [shape: f32[1,512], index: 5, kind: input, shape index: {}]   ;;  %s1432_s6 = inlined_call_operand.vmem [shape: f32[1,512], index: 6, kind: input, shape index: {}]   ;;  %s1433_s7 = inlined_call_operand.hbm [shape: f32[128,384], index: 7, kind: input, shape index: {}]   ;;  %s1434_s8 = inlined_call_operand.vmem [shape: f32[1,384], index: 8, kind: input, shape index: {}]   ;;  %s1435_s9 = inlined_call_operand.hbm [shape: f32[8,384], index: 9, kind: output, shape index: {0}]   ;;  %s1436_s10 = inlined_call_operand.hbm [shape: f32[2,8,128], index: 10, kind: output, shape index: {1}, may-alias: {1,10}]   ;;  %s1437_s11 = inlined_call_operand.hbm [shape: f32[2,8,128], index: 11, kind: output, shape index: {2}, may-alias: {2,11}]  }
   0x1   :  { %18 = vsyncpa [#allocation7], 0 }
   0x2   :  { %19 = vsyncpa [#allocation10], 0 }
   0x3   :  { %20 = vsyncpa [#allocation5], 0 }
   0x4   :  { %21 = vsyncpa [#allocation14], 0  ;;  %s1259_s17 = smov [#allocation6]  }
   0x5   :  { %s41_s18 = sshll.u32 %s1259_s17, 4  ;;  %s42_s18 = int_to_ptr.vmem [resolvable:$true] %s41_s18 }
   0x6   :  { %s1097_s19 = scalar_lea.vmem %s42_s18, 256  ;;  %p1102_p1 = scmp.lt.s32.totalorder %s42_s18, %s42_s18 }
   0x7   :  { %p1098_p0 = scmp.ne.s32.totalorder %s42_s18, %s1097_s19  ;;  %p1103_p2 = scmp.lt.s32.totalorder %s1097_s19, %s1097_s19 }
   0x9   :  { %p1104_p3 = por %p1103_p2, %p1102_p1 }
   0xb   :  { %p1105_p4 = pnand %p1104_p3, %p1098_p0 }
   0xd   :  { %1108 = shalt.err (!%p1105_p4)
}
   0xe   :  { %s1260_s20 = smov 128   ;;  %s1261_s21 = smov 8  }
   0xf   :  { %47 = dma.hbm_to_vmem [thread:$0]  %s1428_s2, 256, %s42_s18, [#allocation7], %s1260_s20, %s1260_s20, %s1261_s21  }
  0x10   :  { %s1262_s24 = smov [#allocation9]   ;;  %s1263_s26 = smov [#allocation3]  }
  0x11   :  { %s65_s25 = sshll.u32 %s1262_s24, 4  ;;  %s29_s27 = sshll.u32 %s1263_s26, 4  ;;  %s66_s25 = int_to_ptr.vmem [resolvable:$true] %s65_s25  ;;  %s30_s27 = int_to_ptr.vmem [resolvable:$true] %s29_s27 }
  0x12   :  { %s1117_s28 = scalar_lea.vmem %s66_s25, 16384  ;;  %p1122_p6 = scmp.lt.s32.totalorder %s66_s25, %s66_s25 }
  0x13   :  { %p1118_p5 = scmp.ne.s32.totalorder %s66_s25, %s1117_s28  ;;  %p1123_p7 = scmp.lt.s32.totalorder %s1117_s28, %s1117_s28 }
  0x15   :  { %p1124_p8 = por %p1123_p7, %p1122_p6 }
  0x17   :  { %p1125_p9 = pnand %p1124_p8, %p1118_p5 }
  0x19   :  { %1128 = shalt.err (!%p1125_p9)
}
  0x1a   :  { %s1264_s29 = smov 512   ;;  %s1265_s30 = smov 32  }
  0x1b   :  { %71 = dma.hbm_to_vmem [thread:$0]  %s1430_s4, 16384, %s66_s25, [#allocation10], %s1264_s29, %s1264_s29, %s1265_s30  }
  0x1c   :  { %s1137_s2 = scalar_lea.vmem %s30_s27, 256  ;;  %p1142_p11 = scmp.lt.s32.totalorder %s30_s27, %s30_s27 }
  0x1d   :  { %p1138_p10 = scmp.ne.s32.totalorder %s30_s27, %s1137_s2  ;;  %p1143_p12 = scmp.lt.s32.totalorder %s1137_s2, %s1137_s2 }
  0x1f   :  { %p1144_p13 = por %p1143_p12, %p1142_p11 }
  0x21   :  { %p1145_p0 = pnand %p1144_p13, %p1138_p10 }
  0x23   :  { %1148 = shalt.err (!%p1145_p0)
}
  0x24   :  { %35 = dma.hbm_to_vmem [thread:$0]  %s1427_s1, 256, %s30_s27, [#allocation4], %s1260_s20, %s1260_s20, %s1261_s21  }
  0x25   :  { %s1266_s16 = smov [#allocation8]   ;;  %s1267_s18 = smov [#allocation11]  }
  0x26   :  { %s53_s17 = sshll.u32 %s1266_s16, 4  ;;  %s81_s4 = sshll.u32 %s1267_s18, 4  ;;  %s54_s17 = int_to_ptr.vmem [resolvable:$true] %s53_s17  ;;  %s82_s4 = int_to_ptr.vmem [resolvable:$true] %s81_s4 }
  0x27   :  { %s1157_s19 = scalar_lea.vmem %s54_s17, 16384  ;;  %p1162_p2 = scmp.lt.s32.totalorder %s54_s17, %s54_s17 }
  0x28   :  { %p1158_p1 = scmp.ne.s32.totalorder %s54_s17, %s1157_s19  ;;  %p1163_p3 = scmp.lt.s32.totalorder %s1157_s19, %s1157_s19 }
  0x2a   :  { %p1164_p4 = por %p1163_p3, %p1162_p2 }
  0x2c   :  { %p1165_p5 = pnand %p1164_p4, %p1158_p1 }
  0x2e   :  { %1168 = shalt.err (!%p1165_p5)
}
  0x2f   :  { %59 = dma.hbm_to_vmem [thread:$0]  %s1429_s3, 16384, %s54_s17, [#allocation7], %s1264_s29, %s1264_s29, %s1265_s30  }
  0x30   :  { %s1177_s24 = scalar_lea.vmem %s82_s4, 6144  ;;  %p1182_p7 = scmp.lt.s32.totalorder %s82_s4, %s82_s4 }
  0x31   :  { %p1178_p6 = scmp.ne.s32.totalorder %s82_s4, %s1177_s24  ;;  %p1183_p8 = scmp.lt.s32.totalorder %s1177_s24, %s1177_s24 }
  0x33   :  { %p1184_p9 = por %p1183_p8, %p1182_p7 }
  0x35   :  { %p1185_p10 = pnand %p1184_p9, %p1178_p6 }
  0x37   :  { %1188 = shalt.err (!%p1185_p10)
}
  0x38   :  { %s1268_s1 = smov 384   ;;  %s1269_s25 = smov 24  }
  0x39   :  { %87 = dma.hbm_to_vmem [thread:$0]  %s1433_s7, 6144, %s82_s4, [#allocation10], %s1268_s1, %s1268_s1, %s1269_s25  }
  0x3a   :  { %1249 = dma.done.wait [#allocation4], 256  }
  0x3b   :  { %1250 = vsyncadd [#allocation4], 4294967040 }
  0x3c   :  { %1251 = dma.done.wait [#allocation7], 16640  }
  0x3d   :  { %1252 = vsyncadd [#allocation7], 4294950656 }
  0x3e   :  { %1253 = dma.done.wait [#allocation10], 22528  }
  0x3f   :  { %1254 = vsyncadd [#allocation10], 4294944768  ;;  %v173_v0 = vld [vmem:[#allocation8 + $0x1e8] sm:$0xff]  ;;  %v172_v1 = vld [vmem:[#allocation8 + $0x1e0] sm:$0xff]  ;;  %vm1271_vm0 = vmmov 0  }
  0x40   :  { %v169_v2 = vld [vmem:[#allocation8 + $0x1c8] sm:$0xff]  ;;  %262 = vmatprep.subr.mxu0 %v173_v0  ;;  %v168_v3 = vld [vmem:[#allocation8 + $0x1c0] sm:$0xff]  ;;  %v175_v5 = vld [vmem:[#allocation8 + $0x1f8] sm:$0xff] }
  0x41   :  { %263 = vmatpush1.msra.mxu0 %v172_v1  ;;  %v165_v4 = vld [vmem:[#allocation8 + $0x1a8] sm:$0xff]  ;;  %v164_v6 = vld [vmem:[#allocation8 + $0x1a0] sm:$0xff]  ;;  %333 = vmatprep.subr.mxu1 %v175_v5  ;;  %v174_v7 = vld [vmem:[#allocation8 + $0x1f0] sm:$0xff] }
  0x42   :  { %264 = vmatprep.subr.mxu0 %v169_v2  ;;  %v171_v8 = vld [vmem:[#allocation8 + $0x1d8] sm:$0xff]  ;;  %v161_v9 = vld [vmem:[#allocation8 + $0x188] sm:$0xff]  ;;  %334 = vmatpush1.msra.mxu1 %v174_v7  ;;  %v170_v10 = vld [vmem:[#allocation8 + $0x1d0] sm:$0xff] }
  0x43   :  { %265 = vmatpush1.msra.mxu0 %v168_v3  ;;  %v160_v11 = vld [vmem:[#allocation8 + $0x180] sm:$0xff]  ;;  %335 = vmatprep.subr.mxu1 %v171_v8  ;;  %v167_v12 = vld [vmem:[#allocation8 + $0x1b8] sm:$0xff]  ;;  %v166_v13 = vld [vmem:[#allocation8 + $0x1b0] sm:$0xff] }
  0x44   :  { %266 = vmatprep.subr.mxu0 %v165_v4  ;;  %v157_v14 = vld [vmem:[#allocation8 + $0x168] sm:$0xff]  ;;  %336 = vmatpush1.msra.mxu1 %v170_v10  ;;  %v163_v15 = vld [vmem:[#allocation8 + $0x198] sm:$0xff]  ;;  %v156_v16 = vld [vmem:[#allocation8 + $0x160] sm:$0xff] }
  0x45   :  { %267 = vmatpush1.msra.mxu0 %v164_v6  ;;  %337 = vmatprep.subr.mxu1 %v167_v12  ;;  %v162_v17 = vld [vmem:[#allocation8 + $0x190] sm:$0xff]  ;;  %v153_v18 = vld [vmem:[#allocation8 + $0x148] sm:$0xff]  ;;  %v159_v19 = vld [vmem:[#allocation8 + $0x178] sm:$0xff] }
  0x46   :  { %268 = vmatprep.subr.mxu0 %v161_v9  ;;  %338 = vmatpush1.msra.mxu1 %v166_v13  ;;  %v152_v20 = vld [vmem:[#allocation8 + $0x140] sm:$0xff]  ;;  %v158_v21 = vld [vmem:[#allocation8 + $0x170] sm:$0xff]  ;;  %v149_v22 = vld [vmem:[#allocation8 + $0x128] sm:$0xff] }
  0x47   :  { %269 = vmatpush1.msra.mxu0 %v160_v11  ;;  %339 = vmatprep.subr.mxu1 %v163_v15  ;;  %v155_v23 = vld [vmem:[#allocation8 + $0x158] sm:$0xff]  ;;  %v148_v24 = vld [vmem:[#allocation8 + $0x120] sm:$0xff]  ;;  %v154_v25 = vld [vmem:[#allocation8 + $0x150] sm:$0xff] }
  0x48   :  { %270 = vmatprep.subr.mxu0 %v157_v14  ;;  %340 = vmatpush1.msra.mxu1 %v162_v17  ;;  %v145_v26 = vld [vmem:[#allocation8 + $0x108] sm:$0xff]  ;;  %v151_v27 = vld [vmem:[#allocation8 + $0x138] sm:$0xff]  ;;  %v144_v28 = vld [vmem:[#allocation8 + $0x100] sm:$0xff] }
  0x49   :  { %271 = vmatpush1.msra.mxu0 %v156_v16  ;;  %341 = vmatprep.subr.mxu1 %v159_v19  ;;  %v150_v29 = vld [vmem:[#allocation8 + $0x130] sm:$0xff]  ;;  %v141_v30 = vld [vmem:[#allocation8 + $0xe8] sm:$0xff]  ;;  %v147_v31 = vld [vmem:[#allocation8 + $0x118] sm:$0xff] }
  0x4a   :  { %272 = vmatprep.subr.mxu0 %v153_v18  ;;  %342 = vmatpush1.msra.mxu1 %v158_v21  ;;  %v140_v32 = vld [vmem:[#allocation8 + $0xe0] sm:$0xff]  ;;  %v146_v33 = vld [vmem:[#allocation8 + $0x110] sm:$0xff]  ;;  %v137_v34 = vld [vmem:[#allocation8 + $0xc8] sm:$0xff] }
  0x4b   :  { %273 = vmatpush1.msra.mxu0 %v152_v20  ;;  %343 = vmatprep.subr.mxu1 %v155_v23  ;;  %v143_v35 = vld [vmem:[#allocation8 + $0xf8] sm:$0xff]  ;;  %v136_v36 = vld [vmem:[#allocation8 + $0xc0] sm:$0xff]  ;;  %v142_v37 = vld [vmem:[#allocation8 + $0xf0] sm:$0xff] }
  0x4c   :  { %274 = vmatprep.subr.mxu0 %v149_v22  ;;  %344 = vmatpush1.msra.mxu1 %v154_v25  ;;  %v133_v38 = vld [vmem:[#allocation8 + $0xa8] sm:$0xff]  ;;  %v139_v39 = vld [vmem:[#allocation8 + $0xd8] sm:$0xff]  ;;  %v132_v40 = vld [vmem:[#allocation8 + $0xa0] sm:$0xff] }
  0x4d   :  { %275 = vmatpush1.msra.mxu0 %v148_v24  ;;  %345 = vmatprep.subr.mxu1 %v151_v27  ;;  %v138_v41 = vld [vmem:[#allocation8 + $0xd0] sm:$0xff]  ;;  %v129_v42 = vld [vmem:[#allocation8 + $0x88] sm:$0xff]  ;;  %v135_v43 = vld [vmem:[#allocation8 + $0xb8] sm:$0xff] }
  0x4e   :  { %276 = vmatprep.subr.mxu0 %v145_v26  ;;  %346 = vmatpush1.msra.mxu1 %v150_v29  ;;  %v128_v44 = vld [vmem:[#allocation8 + $0x80] sm:$0xff]  ;;  %v134_v45 = vld [vmem:[#allocation8 + $0xb0] sm:$0xff]  ;;  %v125_v46 = vld [vmem:[#allocation8 + $0x68] sm:$0xff] }
  0x4f   :  { %277 = vmatpush1.msra.mxu0 %v144_v28  ;;  %347 = vmatprep.subr.mxu1 %v147_v31  ;;  %v131_v47 = vld [vmem:[#allocation8 + $0x98] sm:$0xff]  ;;  %v124_v48 = vld [vmem:[#allocation8 + $0x60] sm:$0xff]  ;;  %v130_v49 = vld [vmem:[#allocation8 + $0x90] sm:$0xff] }
  0x50   :  { %278 = vmatprep.subr.mxu0 %v141_v30  ;;  %348 = vmatpush1.msra.mxu1 %v146_v33  ;;  %v121_v50 = vld [vmem:[#allocation8 + $0x48] sm:$0xff]  ;;  %v127_v51 = vld [vmem:[#allocation8 + $0x78] sm:$0xff]  ;;  %v120_v52 = vld [vmem:[#allocation8 + $0x40] sm:$0xff] }
  0x51   :  { %279 = vmatpush1.msra.mxu0 %v140_v32  ;;  %349 = vmatprep.subr.mxu1 %v143_v35  ;;  %v126_v53 = vld [vmem:[#allocation8 + $0x70] sm:$0xff]  ;;  %v117_v54 = vld [vmem:[#allocation8 + $0x28] sm:$0xff]  ;;  %v123_v55 = vld [vmem:[#allocation8 + $0x58] sm:$0xff] }
  0x52   :  { %280 = vmatprep.subr.mxu0 %v137_v34  ;;  %350 = vmatpush1.msra.mxu1 %v142_v37  ;;  %v116_v56 = vld [vmem:[#allocation8 + $0x20] sm:$0xff]  ;;  %v122_v57 = vld [vmem:[#allocation8 + $0x50] sm:$0xff]  ;;  %v113_v58 = vld [vmem:[#allocation8 + $0x8] sm:$0xff] }
  0x53   :  { %281 = vmatpush1.msra.mxu0 %v136_v36  ;;  %351 = vmatprep.subr.mxu1 %v139_v39  ;;  %v119_v59 = vld [vmem:[#allocation8 + $0x38] sm:$0xff]  ;;  %v112_v60 = vld [vmem:[#allocation8] sm:$0xff]  ;;  %v118_v61 = vld [vmem:[#allocation8 + $0x30] sm:$0xff] }
  0x54   :  { %282 = vmatprep.subr.mxu0 %v133_v38  ;;  %352 = vmatpush1.msra.mxu1 %v138_v41  ;;  %v237_v62 = vld [vmem:[#allocation8 + $0x3e8] sm:$0xff]  ;;  %v115_v63 = vld [vmem:[#allocation8 + $0x18] sm:$0xff]  ;;  %v236_v0 = vld [vmem:[#allocation8 + $0x3e0] sm:$0xff] }
  0x55   :  { %283 = vmatpush1.msra.mxu0 %v132_v40  ;;  %353 = vmatprep.subr.mxu1 %v135_v43  ;;  %v114_v1 = vld [vmem:[#allocation8 + $0x10] sm:$0xff]  ;;  %v233_v2 = vld [vmem:[#allocation8 + $0x3c8] sm:$0xff]  ;;  %v239_v3 = vld [vmem:[#allocation8 + $0x3f8] sm:$0xff] }
  0x56   :  { %284 = vmatprep.subr.mxu0 %v129_v42  ;;  %354 = vmatpush1.msra.mxu1 %v134_v45  ;;  %v232_v4 = vld [vmem:[#allocation8 + $0x3c0] sm:$0xff]  ;;  %v238_v5 = vld [vmem:[#allocation8 + $0x3f0] sm:$0xff]  ;;  %v229_v6 = vld [vmem:[#allocation8 + $0x3a8] sm:$0xff] }
  0x57   :  { %285 = vmatpush1.msra.mxu0 %v128_v44  ;;  %355 = vmatprep.subr.mxu1 %v131_v47  ;;  %v235_v7 = vld [vmem:[#allocation8 + $0x3d8] sm:$0xff]  ;;  %v228_v8 = vld [vmem:[#allocation8 + $0x3a0] sm:$0xff]  ;;  %v234_v9 = vld [vmem:[#allocation8 + $0x3d0] sm:$0xff] }
  0x58   :  { %286 = vmatprep.subr.mxu0 %v125_v46  ;;  %356 = vmatpush1.msra.mxu1 %v130_v49  ;;  %v225_v10 = vld [vmem:[#allocation8 + $0x388] sm:$0xff]  ;;  %v231_v11 = vld [vmem:[#allocation8 + $0x3b8] sm:$0xff]  ;;  %v224_v12 = vld [vmem:[#allocation8 + $0x380] sm:$0xff] }
  0x59   :  { %287 = vmatpush1.msra.mxu0 %v124_v48  ;;  %357 = vmatprep.subr.mxu1 %v127_v51  ;;  %v230_v13 = vld [vmem:[#allocation8 + $0x3b0] sm:$0xff]  ;;  %v221_v14 = vld [vmem:[#allocation8 + $0x368] sm:$0xff]  ;;  %v227_v15 = vld [vmem:[#allocation8 + $0x398] sm:$0xff] }
  0x5a   :  { %288 = vmatprep.subr.mxu0 %v121_v50  ;;  %358 = vmatpush1.msra.mxu1 %v126_v53  ;;  %v220_v16 = vld [vmem:[#allocation8 + $0x360] sm:$0xff]  ;;  %v226_v17 = vld [vmem:[#allocation8 + $0x390] sm:$0xff]  ;;  %v217_v18 = vld [vmem:[#allocation8 + $0x348] sm:$0xff] }
  0x5b   :  { %289 = vmatpush1.msra.mxu0 %v120_v52  ;;  %359 = vmatprep.subr.mxu1 %v123_v55  ;;  %v223_v19 = vld [vmem:[#allocation8 + $0x378] sm:$0xff]  ;;  %v216_v20 = vld [vmem:[#allocation8 + $0x340] sm:$0xff]  ;;  %v222_v21 = vld [vmem:[#allocation8 + $0x370] sm:$0xff] }
  0x5c   :  { %290 = vmatprep.subr.mxu0 %v117_v54  ;;  %360 = vmatpush1.msra.mxu1 %v122_v57  ;;  %v213_v22 = vld [vmem:[#allocation8 + $0x328] sm:$0xff]  ;;  %v219_v23 = vld [vmem:[#allocation8 + $0x358] sm:$0xff]  ;;  %v212_v24 = vld [vmem:[#allocation8 + $0x320] sm:$0xff] }
  0x5d   :  { %291 = vmatpush1.msra.mxu0 %v116_v56  ;;  %361 = vmatprep.subr.mxu1 %v119_v59  ;;  %v218_v25 = vld [vmem:[#allocation8 + $0x350] sm:$0xff]  ;;  %v209_v26 = vld [vmem:[#allocation8 + $0x308] sm:$0xff]  ;;  %v215_v27 = vld [vmem:[#allocation8 + $0x338] sm:$0xff] }
  0x5e   :  { %292 = vmatprep.subr.mxu0 %v113_v58  ;;  %362 = vmatpush1.msra.mxu1 %v118_v61  ;;  %v208_v28 = vld [vmem:[#allocation8 + $0x300] sm:$0xff]  ;;  %v214_v29 = vld [vmem:[#allocation8 + $0x330] sm:$0xff]  ;;  %v205_v30 = vld [vmem:[#allocation8 + $0x2e8] sm:$0xff] }
  0x5f   :  { %293 = vmatpush1.msra.mxu0 %v112_v60  ;;  %363 = vmatprep.subr.mxu1 %v115_v63  ;;  %v211_v31 = vld [vmem:[#allocation8 + $0x318] sm:$0xff]  ;;  %v204_v32 = vld [vmem:[#allocation8 + $0x2e0] sm:$0xff]  ;;  %v210_v33 = vld [vmem:[#allocation8 + $0x310] sm:$0xff] }
  0x60   :  { %294 = vmatprep.subr.mxu0 %v237_v62  ;;  %364 = vmatpush1.msra.mxu1 %v114_v1  ;;  %v201_v34 = vld [vmem:[#allocation8 + $0x2c8] sm:$0xff]  ;;  %v207_v35 = vld [vmem:[#allocation8 + $0x2f8] sm:$0xff]  ;;  %v200_v36 = vld [vmem:[#allocation8 + $0x2c0] sm:$0xff] }
  0x61   :  { %295 = vmatpush2.msra.mxu0 %v236_v0  ;;  %365 = vmatprep.subr.mxu1 %v239_v3  ;;  %v206_v37 = vld [vmem:[#allocation8 + $0x2f0] sm:$0xff]  ;;  %v197_v38 = vld [vmem:[#allocation8 + $0x2a8] sm:$0xff]  ;;  %v203_v39 = vld [vmem:[#allocation8 + $0x2d8] sm:$0xff] }
  0x62   :  { %296 = vmatprep.subr.mxu0 %v233_v2  ;;  %366 = vmatpush2.msra.mxu1 %v238_v5  ;;  %v196_v40 = vld [vmem:[#allocation8 + $0x2a0] sm:$0xff]  ;;  %v202_v41 = vld [vmem:[#allocation8 + $0x2d0] sm:$0xff]  ;;  %v193_v42 = vld [vmem:[#allocation8 + $0x288] sm:$0xff] }
  0x63   :  { %297 = vmatpush2.msra.mxu0 %v232_v4  ;;  %367 = vmatprep.subr.mxu1 %v235_v7  ;;  %v199_v43 = vld [vmem:[#allocation8 + $0x2b8] sm:$0xff]  ;;  %v192_v44 = vld [vmem:[#allocation8 + $0x280] sm:$0xff]  ;;  %v198_v45 = vld [vmem:[#allocation8 + $0x2b0] sm:$0xff] }
  0x64   :  { %298 = vmatprep.subr.mxu0 %v229_v6  ;;  %368 = vmatpush2.msra.mxu1 %v234_v9  ;;  %v189_v46 = vld [vmem:[#allocation8 + $0x268] sm:$0xff]  ;;  %v195_v47 = vld [vmem:[#allocation8 + $0x298] sm:$0xff]  ;;  %v188_v48 = vld [vmem:[#allocation8 + $0x260] sm:$0xff] }
  0x65   :  { %299 = vmatpush2.msra.mxu0 %v228_v8  ;;  %369 = vmatprep.subr.mxu1 %v231_v11  ;;  %v194_v49 = vld [vmem:[#allocation8 + $0x290] sm:$0xff]  ;;  %v185_v50 = vld [vmem:[#allocation8 + $0x248] sm:$0xff]  ;;  %v191_v51 = vld [vmem:[#allocation8 + $0x278] sm:$0xff] }
  0x66   :  { %300 = vmatprep.subr.mxu0 %v225_v10  ;;  %370 = vmatpush2.msra.mxu1 %v230_v13  ;;  %v184_v52 = vld [vmem:[#allocation8 + $0x240] sm:$0xff]  ;;  %v181_v54 = vld [vmem:[#allocation8 + $0x228] sm:$0xff]  ;;  %v190_v55 = vld [vmem:[#allocation8 + $0x270] sm:$0xff] }
  0x67   :  { %301 = vmatpush2.msra.mxu0 %v224_v12  ;;  %371 = vmatprep.subr.mxu1 %v227_v15  ;;  %v110_v53 = vld [vmem:[#allocation3] sm:$0xff]  ;;  %v187_v57 = vld [vmem:[#allocation8 + $0x258] sm:$0xff]  ;;  %v177_v58 = vld [vmem:[#allocation8 + $0x208] sm:$0xff] }
  0x68   :  { %302 = vmatprep.subr.mxu0 %v221_v14  ;;  %372 = vmatpush2.msra.mxu1 %v226_v17  ;;  %v180_v56 = vld [vmem:[#allocation8 + $0x220] sm:$0xff]  ;;  %v186_v59 = vld [vmem:[#allocation8 + $0x250] sm:$0xff]  ;;  %v183_v61 = vld [vmem:[#allocation8 + $0x238] sm:$0xff] }
  0x69   :  { %303 = vmatpush2.msra.mxu0 %v220_v16  ;;  %373 = vmatprep.subr.mxu1 %v223_v19  ;;  %v176_v60 = vld [vmem:[#allocation8 + $0x200] sm:$0xff]  ;;  %v182_v63 = vld [vmem:[#allocation8 + $0x230] sm:$0xff]  ;;  %v179_v0 = vld [vmem:[#allocation8 + $0x218] sm:$0xff] }
  0x6a   :  { %304 = vmatprep.subr.mxu0 %v217_v18  ;;  %374 = vmatpush2.msra.mxu1 %v222_v21  ;;  %v109_v62 = vld [vmem:[%s1426_s0] sm:$0xff]  ;;  %v178_v1 = vld [vmem:[#allocation8 + $0x210] sm:$0xff]  ;;  %v489_v2 = vld [vmem:[#allocation9 + $0x1e8] sm:$0xff] }
  0x6b   :  { %305 = vmatpush2.msra.mxu0 %v216_v20  ;;  %375 = vmatprep.subr.mxu1 %v219_v23  ;;  %v491_v3 = vld [vmem:[#allocation9 + $0x1f8] sm:$0xff]  ;;  %v488_v4 = vld [vmem:[#allocation9 + $0x1e0] sm:$0xff]  ;;  %v490_v5 = vld [vmem:[#allocation9 + $0x1f0] sm:$0xff] }
  0x6c   :  { %306 = vmatprep.subr.mxu0 %v213_v22  ;;  %376 = vmatpush2.msra.mxu1 %v218_v25  ;;  %v485_v6 = vld [vmem:[#allocation9 + $0x1c8] sm:$0xff]  ;;  %v487_v7 = vld [vmem:[#allocation9 + $0x1d8] sm:$0xff]  ;;  %v484_v8 = vld [vmem:[#allocation9 + $0x1c0] sm:$0xff] }
  0x6d   :  { %307 = vmatpush2.msra.mxu0 %v212_v24  ;;  %377 = vmatprep.subr.mxu1 %v215_v27  ;;  %v486_v9 = vld [vmem:[#allocation9 + $0x1d0] sm:$0xff]  ;;  %v481_v10 = vld [vmem:[#allocation9 + $0x1a8] sm:$0xff]  ;;  %v483_v11 = vld [vmem:[#allocation9 + $0x1b8] sm:$0xff] }
  0x6e   :  { %308 = vmatprep.subr.mxu0 %v209_v26  ;;  %378 = vmatpush2.msra.mxu1 %v214_v29  ;;  %v480_v12 = vld [vmem:[#allocation9 + $0x1a0] sm:$0xff]  ;;  %v482_v13 = vld [vmem:[#allocation9 + $0x1b0] sm:$0xff]  ;;  %v477_v14 = vld [vmem:[#allocation9 + $0x188] sm:$0xff] }
  0x6f   :  { %309 = vmatpush2.msra.mxu0 %v208_v28  ;;  %379 = vmatprep.subr.mxu1 %v211_v31  ;;  %v479_v15 = vld [vmem:[#allocation9 + $0x198] sm:$0xff]  ;;  %v476_v16 = vld [vmem:[#allocation9 + $0x180] sm:$0xff]  ;;  %v478_v17 = vld [vmem:[#allocation9 + $0x190] sm:$0xff] }
  0x70   :  { %310 = vmatprep.subr.mxu0 %v205_v30  ;;  %380 = vmatpush2.msra.mxu1 %v210_v33  ;;  %v473_v18 = vld [vmem:[#allocation9 + $0x168] sm:$0xff]  ;;  %v475_v19 = vld [vmem:[#allocation9 + $0x178] sm:$0xff]  ;;  %v472_v20 = vld [vmem:[#allocation9 + $0x160] sm:$0xff] }
  0x71   :  { %311 = vmatpush2.msra.mxu0 %v204_v32  ;;  %381 = vmatprep.subr.mxu1 %v207_v35  ;;  %v474_v21 = vld [vmem:[#allocation9 + $0x170] sm:$0xff]  ;;  %v469_v22 = vld [vmem:[#allocation9 + $0x148] sm:$0xff]  ;;  %v471_v23 = vld [vmem:[#allocation9 + $0x158] sm:$0xff] }
  0x72   :  { %312 = vmatprep.subr.mxu0 %v201_v34  ;;  %382 = vmatpush2.msra.mxu1 %v206_v37  ;;  %v468_v24 = vld [vmem:[#allocation9 + $0x140] sm:$0xff]  ;;  %v470_v25 = vld [vmem:[#allocation9 + $0x150] sm:$0xff]  ;;  %v465_v26 = vld [vmem:[#allocation9 + $0x128] sm:$0xff] }
  0x73   :  { %313 = vmatpush2.msra.mxu0 %v200_v36  ;;  %383 = vmatprep.subr.mxu1 %v203_v39  ;;  %v467_v27 = vld [vmem:[#allocation9 + $0x138] sm:$0xff]  ;;  %v464_v28 = vld [vmem:[#allocation9 + $0x120] sm:$0xff]  ;;  %v466_v29 = vld [vmem:[#allocation9 + $0x130] sm:$0xff] }
  0x74   :  { %314 = vmatprep.subr.mxu0 %v197_v38  ;;  %384 = vmatpush2.msra.mxu1 %v202_v41  ;;  %v461_v30 = vld [vmem:[#allocation9 + $0x108] sm:$0xff]  ;;  %v463_v31 = vld [vmem:[#allocation9 + $0x118] sm:$0xff]  ;;  %v460_v32 = vld [vmem:[#allocation9 + $0x100] sm:$0xff] }
  0x75   :  { %315 = vmatpush2.msra.mxu0 %v196_v40  ;;  %385 = vmatprep.subr.mxu1 %v199_v43  ;;  %v462_v33 = vld [vmem:[#allocation9 + $0x110] sm:$0xff]  ;;  %v457_v34 = vld [vmem:[#allocation9 + $0xe8] sm:$0xff]  ;;  %v459_v35 = vld [vmem:[#allocation9 + $0xf8] sm:$0xff] }
  0x76   :  { %316 = vmatprep.subr.mxu0 %v193_v42  ;;  %386 = vmatpush2.msra.mxu1 %v198_v45  ;;  %v456_v36 = vld [vmem:[#allocation9 + $0xe0] sm:$0xff]  ;;  %v458_v37 = vld [vmem:[#allocation9 + $0xf0] sm:$0xff]  ;;  %v453_v38 = vld [vmem:[#allocation9 + $0xc8] sm:$0xff] }
  0x77   :  { %317 = vmatpush2.msra.mxu0 %v192_v44  ;;  %387 = vmatprep.subr.mxu1 %v195_v47  ;;  %v455_v39 = vld [vmem:[#allocation9 + $0xd8] sm:$0xff]  ;;  %v452_v40 = vld [vmem:[#allocation9 + $0xc0] sm:$0xff]  ;;  %v454_v41 = vld [vmem:[#allocation9 + $0xd0] sm:$0xff] }
  0x78   :  { %318 = vmatprep.subr.mxu0 %v189_v46  ;;  %388 = vmatpush2.msra.mxu1 %v194_v49  ;;  %v449_v42 = vld [vmem:[#allocation9 + $0xa8] sm:$0xff]  ;;  %v451_v43 = vld [vmem:[#allocation9 + $0xb8] sm:$0xff]  ;;  %v448_v44 = vld [vmem:[#allocation9 + $0xa0] sm:$0xff] }
  0x79   :  { %319 = vmatpush2.msra.mxu0 %v188_v48  ;;  %389 = vmatprep.subr.mxu1 %v191_v51  ;;  %v450_v45 = vld [vmem:[#allocation9 + $0xb0] sm:$0xff]  ;;  %v445_v46 = vld [vmem:[#allocation9 + $0x88] sm:$0xff]  ;;  %v447_v47 = vld [vmem:[#allocation9 + $0x98] sm:$0xff] }
  0x7a   :  { %320 = vmatprep.subr.mxu0 %v185_v50  ;;  %326 = vmatprep.mubr.f32.mxu0 %v110_v53  ;;  %v444_v48 = vld [vmem:[#allocation9 + $0x80] sm:$0xff]  ;;  %v446_v49 = vld [vmem:[#allocation9 + $0x90] sm:$0xff]  ;;  %v441_v50 = vld [vmem:[#allocation9 + $0x68] sm:$0xff] }
  0x7b   :  { %321 = vmatpush2.msra.mxu0 %v184_v52  ;;  %390 = vmatpush2.msra.mxu1 %v190_v55  ;;  %v443_v51 = vld [vmem:[#allocation9 + $0x78] sm:$0xff]  ;;  %v440_v52 = vld [vmem:[#allocation9 + $0x60] sm:$0xff] }
  0x7c   :  { %322 = vmatprep.subr.mxu0 %v181_v54  ;;  %391 = vmatprep.subr.mxu1 %v187_v57  ;;  %v437_v54 = vld [vmem:[#allocation9 + $0x48] sm:$0xff]  ;;  %v439_v55 = vld [vmem:[#allocation9 + $0x58] sm:$0xff]  ;;  %v438_v57 = vld [vmem:[#allocation9 + $0x50] sm:$0xff] }
  0x7d   :  { %323 = vmatpush2.msra.mxu0 %v180_v56  ;;  %392 = vmatpush2.msra.mxu1 %v186_v59  ;;  %v436_v56 = vld [vmem:[#allocation9 + $0x40] sm:$0xff]  ;;  %v435_v59 = vld [vmem:[#allocation9 + $0x38] sm:$0xff] }
  0x7e   :  { %324 = vmatprep.subr.mxu0 %v177_v58  ;;  %393 = vmatprep.subr.mxu1 %v183_v61  ;;  %v433_v58 = vld [vmem:[#allocation9 + $0x28] sm:$0xff]  ;;  %v434_v61 = vld [vmem:[#allocation9 + $0x30] sm:$0xff] }
  0x7f   :  { %325 = vmatpush2.msra.mxu0 %v176_v60  ;;  %394 = vmatpush2.msra.mxu1 %v182_v63  ;;  %v432_v60 = vld [vmem:[#allocation9 + $0x20] sm:$0xff]  ;;  %v431_v63 = vld [vmem:[#allocation9 + $0x18] sm:$0xff] }
  0x80   :  { %327 = vmatmul.mubr.f32.vlgmr.msra.gmra.mxu0 %v109_v62  ;;  %395 = vmatprep.subr.mxu1 %v179_v0  ;;  %v428_v0 = vld [vmem:[#allocation9] sm:$0xff] }
  0x81   :  { %397 = vmatprep.mubr.f32.mxu1 %v110_v53  ;;  %396 = vmatpush2.msra.mxu1 %v178_v1  ;;  %v442_v53 = vld [vmem:[#allocation9 + $0x70] sm:$0xff] }
  0x82   :  { %578 = vmatprep.subr.mxu0 %v489_v2  ;;  %398 = vmatmul.mubr.f32.vlgmr.msra.gmra.mxu1 %v109_v62  ;;  %v429_v62 = vld [vmem:[#allocation9 + $0x8] sm:$0xff]  ;;  %v430_v1 = vld [vmem:[#allocation9 + $0x10] sm:$0xff] }
  0x83   :  { %649 = vmatprep.subr.mxu1 %v491_v3  ;;  %579 = vmatpush1.msra.mxu0 %v488_v4  ;;  %v553_v2 = vld [vmem:[#allocation9 + $0x3e8] sm:$0xff]  ;;  %v555_v3 = vld [vmem:[#allocation9 + $0x3f8] sm:$0xff]  ;;  %v552_v4 = vld [vmem:[#allocation9 + $0x3e0] sm:$0xff] }
  0x84   :  { %650 = vmatpush1.msra.mxu1 %v490_v5  ;;  %580 = vmatprep.subr.mxu0 %v485_v6  ;;  %v554_v5 = vld [vmem:[#allocation9 + $0x3f0] sm:$0xff]  ;;  %v549_v6 = vld [vmem:[#allocation9 + $0x3c8] sm:$0xff] }
  0x85   :  { %651 = vmatprep.subr.mxu1 %v487_v7  ;;  %581 = vmatpush1.msra.mxu0 %v484_v8  ;;  %v551_v7 = vld [vmem:[#allocation9 + $0x3d8] sm:$0xff]  ;;  %v548_v8 = vld [vmem:[#allocation9 + $0x3c0] sm:$0xff] }
  0x86   :  { %652 = vmatpush1.msra.mxu1 %v486_v9  ;;  %582 = vmatprep.subr.mxu0 %v481_v10  ;;  %v550_v9 = vld [vmem:[#allocation9 + $0x3d0] sm:$0xff]  ;;  %v545_v10 = vld [vmem:[#allocation9 + $0x3a8] sm:$0xff] }
  0x87   :  { %653 = vmatprep.subr.mxu1 %v483_v11  ;;  %583 = vmatpush1.msra.mxu0 %v480_v12  ;;  %v547_v11 = vld [vmem:[#allocation9 + $0x3b8] sm:$0xff]  ;;  %v544_v12 = vld [vmem:[#allocation9 + $0x3a0] sm:$0xff] }
  0x88   :  { %654 = vmatpush1.msra.mxu1 %v482_v13  ;;  %584 = vmatprep.subr.mxu0 %v477_v14  ;;  %v546_v13 = vld [vmem:[#allocation9 + $0x3b0] sm:$0xff]  ;;  %v541_v14 = vld [vmem:[#allocation9 + $0x388] sm:$0xff] }
  0x89   :  { %655 = vmatprep.subr.mxu1 %v479_v15  ;;  %585 = vmatpush1.msra.mxu0 %v476_v16  ;;  %v543_v15 = vld [vmem:[#allocation9 + $0x398] sm:$0xff]  ;;  %v540_v16 = vld [vmem:[#allocation9 + $0x380] sm:$0xff] }
  0x8a   :  { %656 = vmatpush1.msra.mxu1 %v478_v17  ;;  %586 = vmatprep.subr.mxu0 %v473_v18  ;;  %v542_v17 = vld [vmem:[#allocation9 + $0x390] sm:$0xff]  ;;  %v537_v18 = vld [vmem:[#allocation9 + $0x368] sm:$0xff] }
  0x8b   :  { %657 = vmatprep.subr.mxu1 %v475_v19  ;;  %587 = vmatpush1.msra.mxu0 %v472_v20  ;;  %v539_v19 = vld [vmem:[#allocation9 + $0x378] sm:$0xff]  ;;  %v536_v20 = vld [vmem:[#allocation9 + $0x360] sm:$0xff] }
  0x8c   :  { %658 = vmatpush1.msra.mxu1 %v474_v21  ;;  %588 = vmatprep.subr.mxu0 %v469_v22  ;;  %v538_v21 = vld [vmem:[#allocation9 + $0x370] sm:$0xff]  ;;  %v533_v22 = vld [vmem:[#allocation9 + $0x348] sm:$0xff] }
  0x8d   :  { %659 = vmatprep.subr.mxu1 %v471_v23  ;;  %589 = vmatpush1.msra.mxu0 %v468_v24  ;;  %v535_v23 = vld [vmem:[#allocation9 + $0x358] sm:$0xff]  ;;  %v532_v24 = vld [vmem:[#allocation9 + $0x340] sm:$0xff] }
  0x8e   :  { %660 = vmatpush1.msra.mxu1 %v470_v25  ;;  %590 = vmatprep.subr.mxu0 %v465_v26  ;;  %v534_v25 = vld [vmem:[#allocation9 + $0x350] sm:$0xff]  ;;  %v529_v26 = vld [vmem:[#allocation9 + $0x328] sm:$0xff] }
  0x8f   :  { %661 = vmatprep.subr.mxu1 %v467_v27  ;;  %591 = vmatpush1.msra.mxu0 %v464_v28  ;;  %v531_v27 = vld [vmem:[#allocation9 + $0x338] sm:$0xff]  ;;  %v528_v28 = vld [vmem:[#allocation9 + $0x320] sm:$0xff] }
  0x90   :  { %662 = vmatpush1.msra.mxu1 %v466_v29  ;;  %592 = vmatprep.subr.mxu0 %v461_v30  ;;  %v530_v29 = vld [vmem:[#allocation9 + $0x330] sm:$0xff]  ;;  %v525_v30 = vld [vmem:[#allocation9 + $0x308] sm:$0xff] }
  0x91   :  { %663 = vmatprep.subr.mxu1 %v463_v31  ;;  %593 = vmatpush1.msra.mxu0 %v460_v32  ;;  %v527_v31 = vld [vmem:[#allocation9 + $0x318] sm:$0xff]  ;;  %v524_v32 = vld [vmem:[#allocation9 + $0x300] sm:$0xff] }
  0x92   :  { %664 = vmatpush1.msra.mxu1 %v462_v33  ;;  %594 = vmatprep.subr.mxu0 %v457_v34  ;;  %v526_v33 = vld [vmem:[#allocation9 + $0x310] sm:$0xff]  ;;  %v521_v34 = vld [vmem:[#allocation9 + $0x2e8] sm:$0xff] }
  0x93   :  { %665 = vmatprep.subr.mxu1 %v459_v35  ;;  %595 = vmatpush1.msra.mxu0 %v456_v36  ;;  %v523_v35 = vld [vmem:[#allocation9 + $0x2f8] sm:$0xff]  ;;  %v520_v36 = vld [vmem:[#allocation9 + $0x2e0] sm:$0xff] }
  0x94   :  { %666 = vmatpush1.msra.mxu1 %v458_v37  ;;  %596 = vmatprep.subr.mxu0 %v453_v38  ;;  %v522_v37 = vld [vmem:[#allocation9 + $0x2f0] sm:$0xff]  ;;  %v517_v38 = vld [vmem:[#allocation9 + $0x2c8] sm:$0xff] }
  0x95   :  { %667 = vmatprep.subr.mxu1 %v455_v39  ;;  %597 = vmatpush1.msra.mxu0 %v452_v40  ;;  %v519_v39 = vld [vmem:[#allocation9 + $0x2d8] sm:$0xff]  ;;  %v516_v40 = vld [vmem:[#allocation9 + $0x2c0] sm:$0xff] }
  0x96   :  { %668 = vmatpush1.msra.mxu1 %v454_v41  ;;  %598 = vmatprep.subr.mxu0 %v449_v42  ;;  %v518_v41 = vld [vmem:[#allocation9 + $0x2d0] sm:$0xff]  ;;  %v513_v42 = vld [vmem:[#allocation9 + $0x2a8] sm:$0xff] }
  0x97   :  { %669 = vmatprep.subr.mxu1 %v451_v43  ;;  %599 = vmatpush1.msra.mxu0 %v448_v44  ;;  %v515_v43 = vld [vmem:[#allocation9 + $0x2b8] sm:$0xff]  ;;  %v512_v44 = vld [vmem:[#allocation9 + $0x2a0] sm:$0xff] }
  0x98   :  { %670 = vmatpush1.msra.mxu1 %v450_v45  ;;  %600 = vmatprep.subr.mxu0 %v445_v46  ;;  %v514_v45 = vld [vmem:[#allocation9 + $0x2b0] sm:$0xff]  ;;  %v509_v46 = vld [vmem:[#allocation9 + $0x288] sm:$0xff] }
  0x99   :  { %671 = vmatprep.subr.mxu1 %v447_v47  ;;  %601 = vmatpush1.msra.mxu0 %v444_v48  ;;  %v511_v47 = vld [vmem:[#allocation9 + $0x298] sm:$0xff]  ;;  %v508_v48 = vld [vmem:[#allocation9 + $0x280] sm:$0xff] }
  0x9a   :  { %672 = vmatpush1.msra.mxu1 %v446_v49  ;;  %602 = vmatprep.subr.mxu0 %v441_v50  ;;  %v510_v49 = vld [vmem:[#allocation9 + $0x290] sm:$0xff]  ;;  %v505_v50 = vld [vmem:[#allocation9 + $0x268] sm:$0xff] }
  0x9b   :  { %673 = vmatprep.subr.mxu1 %v443_v51  ;;  %603 = vmatpush1.msra.mxu0 %v440_v52  ;;  %v507_v51 = vld [vmem:[#allocation9 + $0x278] sm:$0xff]  ;;  %v504_v52 = vld [vmem:[#allocation9 + $0x260] sm:$0xff] }
  0x9c   :  { %674 = vmatpush1.msra.mxu1 %v442_v53  ;;  %604 = vmatprep.subr.mxu0 %v437_v54  ;;  %v506_v53 = vld [vmem:[#allocation9 + $0x270] sm:$0xff]  ;;  %v501_v54 = vld [vmem:[#allocation9 + $0x248] sm:$0xff] }
  0x9d   :  { %675 = vmatprep.subr.mxu1 %v439_v55  ;;  %605 = vmatpush1.msra.mxu0 %v436_v56  ;;  %v503_v55 = vld [vmem:[#allocation9 + $0x258] sm:$0xff]  ;;  %v500_v56 = vld [vmem:[#allocation9 + $0x240] sm:$0xff] }
  0x9e   :  { %676 = vmatpush1.msra.mxu1 %v438_v57  ;;  %606 = vmatprep.subr.mxu0 %v433_v58  ;;  %v502_v57 = vld [vmem:[#allocation9 + $0x250] sm:$0xff]  ;;  %v497_v58 = vld [vmem:[#allocation9 + $0x228] sm:$0xff] }
  0x9f   :  { %677 = vmatprep.subr.mxu1 %v435_v59  ;;  %607 = vmatpush1.msra.mxu0 %v432_v60  ;;  %v499_v59 = vld [vmem:[#allocation9 + $0x238] sm:$0xff]  ;;  %v496_v60 = vld [vmem:[#allocation9 + $0x220] sm:$0xff] }
  0xa0   :  { %678 = vmatpush1.msra.mxu1 %v434_v61  ;;  %608 = vmatprep.subr.mxu0 %v429_v62  ;;  %v498_v61 = vld [vmem:[#allocation9 + $0x230] sm:$0xff]  ;;  %v493_v62 = vld [vmem:[#allocation9 + $0x208] sm:$0xff] }
  0xa1   :  { %679 = vmatprep.subr.mxu1 %v431_v63  ;;  %609 = vmatpush1.msra.mxu0 %v428_v0  ;;  %v495_v63 = vld [vmem:[#allocation9 + $0x218] sm:$0xff]  ;;  %v492_v0 = vld [vmem:[#allocation9 + $0x200] sm:$0xff] }
  0xa2   :  { %680 = vmatpush1.msra.mxu1 %v430_v1  ;;  %610 = vmatprep.subr.mxu0 %v553_v2  ;;  %v425_v1 = vld [vmem:[#allocation3 + $0x8] sm:$0xff]  ;;  %v494_v2 = vld [vmem:[#allocation9 + $0x210] sm:$0xff] }
  0xa3   :  { %681 = vmatprep.subr.mxu1 %v555_v3  ;;  %611 = vmatpush2.msra.mxu0 %v552_v4  ;;  %v242_v3 = vlaneseq }
  0xa4   :  { %682 = vmatpush2.msra.mxu1 %v554_v5  ;;  %612 = vmatprep.subr.mxu0 %v549_v6  ;;  %v240_v6 = vld [vmem:[%s1431_s5] sm:$0xf] }
  0xa5   :  { %683 = vmatprep.subr.mxu1 %v551_v7  ;;  %613 = vmatpush2.msra.mxu0 %v548_v8  ;;  %v1359_v4 = vshrl.u32 %v242_v3, 7  ;;  %v765_v3 = vld [vmem:[#allocation11 + $0xa8] sm:$0xff] }
  0xa6   :  { %684 = vmatpush2.msra.mxu1 %v550_v9  ;;  %614 = vmatprep.subr.mxu0 %v545_v10 }
  0xa7   :  { %685 = vmatprep.subr.mxu1 %v547_v11  ;;  %615 = vmatpush2.msra.mxu0 %v544_v12  ;;  %v1362_v5 = vsub.s32 0, %v1359_v4  ;;  %v1368_v7 = vsub.s32 1, %v1359_v4  ;;  %v1372_v9 = vsub.s32 2, %v1359_v4 }
  0xa8   :  { %686 = vmatpush2.msra.mxu1 %v546_v13  ;;  %616 = vmatprep.subr.mxu0 %v541_v14 }
  0xa9   :  { %687 = vmatprep.subr.mxu1 %v543_v15  ;;  %617 = vmatpush2.msra.mxu0 %v540_v16  ;;  %v245_v8 = vrot.slane %v240_v6, %v1362_v5  ;;  %v249_v10 = vrot.slane %v240_v6, %v1368_v7  ;;  %v253_v13 = vrot.slane %v240_v6, %v1372_v9 }
  0xaa   :  { %688 = vmatpush2.msra.mxu1 %v542_v17  ;;  %618 = vmatprep.subr.mxu0 %v537_v18 }
  0xab   :  { %689 = vmatprep.subr.mxu1 %v539_v19  ;;  %619 = vmatpush2.msra.mxu0 %v536_v20  ;;  %v256_v20 = vsub.s32 3, %v1359_v4 }
  0xac   :  { %690 = vmatpush2.msra.mxu1 %v538_v21  ;;  %620 = vmatprep.subr.mxu0 %v533_v22 }
  0xad   :  { %691 = vmatprep.subr.mxu1 %v535_v23  ;;  %621 = vmatpush2.msra.mxu0 %v532_v24  ;;  %v257_v21 = vrot.slane %v240_v6, %v256_v20  ;;  %v767_v6 = vld [vmem:[#allocation11 + $0xb8] sm:$0xff] }
  0xae   :  { %692 = vmatpush2.msra.mxu1 %v534_v25  ;;  %622 = vmatprep.subr.mxu0 %v529_v26 }
  0xaf   :  { %693 = vmatprep.subr.mxu1 %v531_v27  ;;  %623 = vmatpush2.msra.mxu0 %v528_v28 }
  0xb0   :  { %694 = vmatpush2.msra.mxu1 %v530_v29  ;;  %624 = vmatprep.subr.mxu0 %v525_v30 }
  0xb1   :  { %695 = vmatprep.subr.mxu1 %v527_v31  ;;  %625 = vmatpush2.msra.mxu0 %v524_v32  ;;  %v111_v31 = vld [vmem:[#allocation6] sm:$0xff] }
  0xb2   :  { %696 = vmatpush2.msra.mxu1 %v526_v33  ;;  %626 = vmatprep.subr.mxu0 %v521_v34 }
  0xb3   :  { %697 = vmatprep.subr.mxu1 %v523_v35  ;;  %627 = vmatpush2.msra.mxu0 %v520_v36 }
  0xb4   :  { %698 = vmatpush2.msra.mxu1 %v522_v37  ;;  %628 = vmatprep.subr.mxu0 %v517_v38 }
  0xb5   :  { %699 = vmatprep.subr.mxu1 %v519_v39  ;;  %629 = vmatpush2.msra.mxu0 %v516_v40 }
  0xb6   :  { %700 = vmatpush2.msra.mxu1 %v518_v41  ;;  %630 = vmatprep.subr.mxu0 %v513_v42  ;;  %v790_v41 = vld [vmem:[#allocation11 + $0x170] sm:$0xff]  ;;  %v1270_v42 = vmov 0.0  }
  0xb7   :  { %701 = vmatprep.subr.mxu1 %v515_v43  ;;  %631 = vmatpush2.msra.mxu0 %v512_v44  ;;  %v789_v43 = vld [vmem:[#allocation11 + $0x168] sm:$0xff]  ;;  %v791_v44 = vld [vmem:[#allocation11 + $0x178] sm:$0xff] }
  0xb8   :  { %702 = vmatpush2.msra.mxu1 %v514_v45  ;;  %632 = vmatprep.subr.mxu0 %v509_v46  ;;  %v787_v45 = vld [vmem:[#allocation11 + $0x158] sm:$0xff]  ;;  %v786_v46 = vld [vmem:[#allocation11 + $0x150] sm:$0xff] }
  0xb9   :  { %703 = vmatprep.subr.mxu1 %v511_v47  ;;  %633 = vmatpush2.msra.mxu0 %v508_v48  ;;  %v788_v47 = vld [vmem:[#allocation11 + $0x160] sm:$0xff] }
  0xba   :  { %704 = vmatpush2.msra.mxu1 %v510_v49  ;;  %634 = vmatprep.subr.mxu0 %v505_v50  ;;  %v784_v48 = vld [vmem:[#allocation11 + $0x140] sm:$0xff]  ;;  %v783_v49 = vld [vmem:[#allocation11 + $0x138] sm:$0xff]  ;;  %v785_v50 = vld [vmem:[#allocation11 + $0x148] sm:$0xff] }
  0xbb   :  { %705 = vmatprep.subr.mxu1 %v507_v51  ;;  %635 = vmatpush2.msra.mxu0 %v504_v52  ;;  %v781_v51 = vld [vmem:[#allocation11 + $0x128] sm:$0xff]  ;;  %v780_v52 = vld [vmem:[#allocation11 + $0x120] sm:$0xff] }
  0xbc   :  { %706 = vmatpush2.msra.mxu1 %v506_v53  ;;  %636 = vmatprep.subr.mxu0 %v501_v54  ;;  %v782_v53 = vld [vmem:[#allocation11 + $0x130] sm:$0xff] }
  0xbd   :  { %707 = vmatprep.subr.mxu1 %v503_v55  ;;  %637 = vmatpush2.msra.mxu0 %v500_v56  ;;  %v778_v54 = vld [vmem:[#allocation11 + $0x110] sm:$0xff]  ;;  %v777_v55 = vld [vmem:[#allocation11 + $0x108] sm:$0xff]  ;;  %v779_v56 = vld [vmem:[#allocation11 + $0x118] sm:$0xff] }
  0xbe   :  { %708 = vmatpush2.msra.mxu1 %v502_v57  ;;  %638 = vmatprep.subr.mxu0 %v497_v58  ;;  %v775_v57 = vld [vmem:[#allocation11 + $0xf8] sm:$0xff]  ;;  %v774_v58 = vld [vmem:[#allocation11 + $0xf0] sm:$0xff] }
  0xbf   :  { %709 = vmatprep.subr.mxu1 %v499_v59  ;;  %639 = vmatpush2.msra.mxu0 %v496_v60  ;;  %v776_v59 = vld [vmem:[#allocation11 + $0x100] sm:$0xff] }
  0xc0   :  { %710 = vmatpush2.msra.mxu1 %v498_v61  ;;  %640 = vmatprep.subr.mxu0 %v493_v62  ;;  %v772_v60 = vld [vmem:[#allocation11 + $0xe0] sm:$0xff]  ;;  %v771_v61 = vld [vmem:[#allocation11 + $0xd8] sm:$0xff]  ;;  %v773_v62 = vld [vmem:[#allocation11 + $0xe8] sm:$0xff] }
  0xc1   :  { %711 = vmatprep.subr.mxu1 %v495_v63  ;;  %641 = vmatpush2.msra.mxu0 %v492_v0  ;;  %v769_v63 = vld [vmem:[#allocation11 + $0xc8] sm:$0xff]  ;;  %v768_v0 = vld [vmem:[#allocation11 + $0xc0] sm:$0xff] }
  0xc2   :  { %642 = vmatprep.mubr.f32.mxu0 %v425_v1  ;;  %712 = vmatpush2.msra.mxu1 %v494_v2  ;;  %v766_v2 = vld [vmem:[#allocation11 + $0xb0] sm:$0xff] }
  0xc3   :  { %713 = vmatprep.mubr.f32.mxu1 %v425_v1  ;;  %809 = vmatprep.subr.mxu0 %v790_v41  ;;  %v770_v1 = vld [vmem:[#allocation11 + $0xd0] sm:$0xff] }
  0xc4   :  { %1018 = vmatprep.subr.mxu1 %v1270_v42 }
 0x140   :  { %v328_v11 = vpop.f32.mrf.mxu0 }
 0x141   :  { %v329_v12 = vadd.f32 %v328_v11, %v245_v8  ;;  %v763_v8 = vld [vmem:[#allocation11 + $0x98] sm:$0xff]  ;;  %v764_v11 = vld [vmem:[#allocation11 + $0xa0] sm:$0xff] }
 0x142   :  { %v330_v14 = vpop.f32.mrf.mxu0  ;;  %v399_v17 = vpop.f32.mrf.mxu1 }
 0x143   :  { %v404_v15 = vmul.f32 0.5, %v329_v12  ;;  %v331_v16 = vadd.f32 %v330_v14, %v249_v10  ;;  %v400_v19 = vadd.f32 %v399_v17, %v253_v13  ;;  %v762_v10 = vld [vmem:[#allocation11 + $0x90] sm:$0xff]  ;;  %v760_v12 = vld [vmem:[#allocation11 + $0x80] sm:$0xff]  ;;  %v759_v13 = vld [vmem:[#allocation11 + $0x78] sm:$0xff] }
 0x144   :  { %v401_v22 = vpop.f32.mrf.mxu1  ;;  %v761_v14 = vld [vmem:[#allocation11 + $0x88] sm:$0xff]  ;;  %v758_v17 = vld [vmem:[#allocation11 + $0x70] sm:$0xff] }
 0x145   :  { %1069 = vtanh.f32 %v404_v15  ;;  %v408_v18 = vmul.f32 0.5, %v331_v16  ;;  %v402_v23 = vadd.f32 %v401_v22, %v257_v21  ;;  %v757_v15 = vld [vmem:[#allocation11 + $0x68] sm:$0xff]  ;;  %v756_v16 = vld [vmem:[#allocation11 + $0x60] sm:$0xff]  ;;  %v755_v21 = vld [vmem:[#allocation11 + $0x58] sm:$0xff] }
 0x146   :  { %v751_v22 = vld [vmem:[#allocation11 + $0x38] sm:$0xff] }
 0x147   :  { %1071 = vtanh.f32 %v408_v18  ;;  %v413_v24 = vmul.f32 0.5, %v402_v23  ;;  %v754_v18 = vld [vmem:[#allocation11 + $0x50] sm:$0xff] }
 0x148   :  { %1073 = vtanh.f32 %v400_v19  ;;  %v753_v19 = vld [vmem:[#allocation11 + $0x48] sm:$0xff]  ;;  %v750_v23 = vld [vmem:[#allocation11 + $0x30] sm:$0xff] }
 0x149   :  { %1075 = vtanh.f32 %v413_v24  ;;  %v752_v24 = vld [vmem:[#allocation11 + $0x40] sm:$0xff] }
 0x152   :  { %v1070_v25 = vpop.eup %1069 }
 0x153   :  { %v406_v26 = vmul.f32 0.5, %v1070_v25  ;;  %v748_v25 = vld [vmem:[#allocation11 + $0x20] sm:$0xff] }
 0x154   :  { %v1072_v27 = vpop.eup %1071 }
 0x155   :  { %v407_v28 = vadd.f32 0.5, %v406_v26  ;;  %v410_v29 = vmul.f32 0.5, %v1072_v27  ;;  %v1074_v30 = vpop.eup %1073  ;;  %v747_v26 = vld [vmem:[#allocation11 + $0x18] sm:$0xff]  ;;  %v749_v27 = vld [vmem:[#allocation11 + $0x28] sm:$0xff] }
 0x156   :  { %v1076_v36 = vpop.eup %1075 }
 0x157   :  { %v411_v32 = vadd.f32 0.5, %v410_v29  ;;  %v418_v34 = vmul.f32 %v1074_v30, %v407_v28  ;;  %v415_v37 = vmul.f32 0.5, %v1076_v36  ;;  %v745_v28 = vld [vmem:[#allocation11 + $0x8] sm:$0xff]  ;;  %v744_v29 = vld [vmem:[#allocation11] sm:$0xff]  ;;  %v746_v30 = vld [vmem:[#allocation11 + $0x10] sm:$0xff] }
 0x159   :  { %v417_v33 = vmul.f32 %v411_v32, %v111_v31  ;;  %v416_v38 = vadd.f32 0.5, %v415_v37  ;;  %v556_v31 = vld [vmem:[%s1432_s6] sm:$0xf]  ;;  %s1272_s6 = smov [#allocation13]  }
 0x15a   :  { %v561_v32 = vrot.slane %v556_v31, %v1362_v5  ;;  %s968_s30 = sshll.u32 %s1272_s6, 4  ;;  %s969_s30 = int_to_ptr.vmem [resolvable:$true] %s968_s30 }
 0x15b   :  { %v419_v35 = vadd.f32 %v418_v34, %v417_v33  ;;  %v565_v33 = vrot.slane %v556_v31, %v1368_v7  ;;  %s1189_s12 = scalar_lea.vmem %s969_s30, 256  ;;  %p1194_p12 = scmp.lt.s32.totalorder %s969_s30, %s969_s30 }
 0x15c   :  { %p1190_p11 = scmp.ne.s32.totalorder %s969_s30, %s1189_s12  ;;  %p1195_p13 = scmp.lt.s32.totalorder %s1189_s12, %s1189_s12 }
 0x15d   :  { %1077 = vtanh.f32 %v419_v35  ;;  %423 = vst [vmem:[#allocation15] sm:$0xff] %v419_v35 }
 0x15e   :  { %p1196_p0 = por %p1195_p13, %p1194_p12 }
 0x160   :  { %p1197_p1 = pnand %p1196_p0, %p1190_p11 }
 0x16a   :  { %v1078_v39 = vpop.eup %1077 }
 0x16b   :  { %v421_v40 = vmul.f32 %v1078_v39, %v416_v38  ;;  %v569_v38 = vrot.slane %v556_v31, %v1372_v9 }
 0x16d   :  { %643 = vmatmul.mubr.f32.vlgmr.msra.gmra.mxu0 %v421_v40  ;;  %422 = vst [vmem:[#allocation13] sm:$0xff] %v421_v40  ;;  %714 = vmatmul.mubr.f32.vlgmr.msra.gmra.mxu1 %v421_v40 }
 0x16e   :  { %810 = vmatpush1.msra.mxu0 %v789_v43  ;;  %1019 = vmatpush3.msra.mxu1 %v791_v44 }
 0x16f   :  { %811 = vmatprep.subr.mxu0 %v787_v45  ;;  %1020 = vmatprep.subr.mxu1 %v1270_v42 }
 0x170   :  { %812 = vmatpush1.msra.mxu0 %v786_v46  ;;  %1021 = vmatpush3.msra.mxu1 %v788_v47 }
 0x171   :  { %813 = vmatprep.subr.mxu0 %v784_v48  ;;  %1022 = vmatprep.subr.mxu1 %v1270_v42 }
 0x172   :  { %814 = vmatpush1.msra.mxu0 %v783_v49  ;;  %1023 = vmatpush3.msra.mxu1 %v785_v50 }
 0x173   :  { %815 = vmatprep.subr.mxu0 %v781_v51  ;;  %1024 = vmatprep.subr.mxu1 %v1270_v42 }
 0x174   :  { %816 = vmatpush1.msra.mxu0 %v780_v52  ;;  %1025 = vmatpush3.msra.mxu1 %v782_v53  ;;  %v427_v52 = vld [vmem:[#allocation6 + $0x8] sm:$0xff] }
 0x175   :  { %817 = vmatprep.subr.mxu0 %v778_v54  ;;  %1026 = vmatprep.subr.mxu1 %v1270_v42 }
 0x176   :  { %818 = vmatpush1.msra.mxu0 %v777_v55  ;;  %1027 = vmatpush3.msra.mxu1 %v779_v56 }
 0x177   :  { %819 = vmatprep.subr.mxu0 %v775_v57  ;;  %1028 = vmatprep.subr.mxu1 %v1270_v42 }
 0x178   :  { %820 = vmatpush1.msra.mxu0 %v774_v58  ;;  %1029 = vmatpush3.msra.mxu1 %v776_v59 }
 0x179   :  { %821 = vmatprep.subr.mxu0 %v772_v60  ;;  %1030 = vmatprep.subr.mxu1 %v1270_v42 }
 0x17a   :  { %822 = vmatpush1.msra.mxu0 %v771_v61  ;;  %1031 = vmatpush3.msra.mxu1 %v773_v62 }
 0x17b   :  { %823 = vmatprep.subr.mxu0 %v769_v63  ;;  %1032 = vmatprep.subr.mxu1 %v1270_v42 }
 0x17c   :  { %824 = vmatpush1.msra.mxu0 %v768_v0  ;;  %1033 = vmatpush3.msra.mxu1 %v770_v1 }
 0x17d   :  { %825 = vmatprep.subr.mxu0 %v766_v2  ;;  %1034 = vmatprep.subr.mxu1 %v1270_v42 }
 0x17e   :  { %826 = vmatpush1.msra.mxu0 %v765_v3  ;;  %1035 = vmatpush3.msra.mxu1 %v767_v6 }
 0x17f   :  { %827 = vmatprep.subr.mxu0 %v763_v8  ;;  %1036 = vmatprep.subr.mxu1 %v1270_v42 }
 0x180   :  { %828 = vmatpush1.msra.mxu0 %v762_v10  ;;  %1037 = vmatpush3.msra.mxu1 %v764_v11 }
 0x181   :  { %829 = vmatprep.subr.mxu0 %v760_v12  ;;  %1038 = vmatprep.subr.mxu1 %v1270_v42 }
 0x182   :  { %830 = vmatpush1.msra.mxu0 %v759_v13  ;;  %1039 = vmatpush3.msra.mxu1 %v761_v14 }
 0x183   :  { %831 = vmatprep.subr.mxu0 %v757_v15  ;;  %1040 = vmatprep.subr.mxu1 %v1270_v42 }
 0x184   :  { %832 = vmatpush1.msra.mxu0 %v756_v16  ;;  %1041 = vmatpush3.msra.mxu1 %v758_v17 }
 0x185   :  { %833 = vmatprep.subr.mxu0 %v754_v18  ;;  %1042 = vmatprep.subr.mxu1 %v1270_v42 }
 0x186   :  { %834 = vmatpush1.msra.mxu0 %v753_v19  ;;  %1043 = vmatpush3.msra.mxu1 %v755_v21 }
 0x187   :  { %835 = vmatprep.subr.mxu0 %v751_v22  ;;  %1044 = vmatprep.subr.mxu1 %v1270_v42 }
 0x188   :  { %836 = vmatpush1.msra.mxu0 %v750_v23  ;;  %1045 = vmatpush3.msra.mxu1 %v752_v24 }
 0x189   :  { %837 = vmatprep.subr.mxu0 %v748_v25  ;;  %1046 = vmatprep.subr.mxu1 %v1270_v42 }
 0x18a   :  { %838 = vmatpush1.msra.mxu0 %v747_v26  ;;  %1047 = vmatpush3.msra.mxu1 %v749_v27 }
 0x18b   :  { %839 = vmatprep.subr.mxu0 %v745_v28  ;;  %1048 = vmatprep.subr.mxu1 %v1270_v42 }
 0x18c   :  { %840 = vmatpush1.msra.mxu0 %v744_v29  ;;  %873 = vmatprep.mubr.f32.mxu0 %v1270_v42 }
 0x18d   :  { %1049 = vmatpush3.msra.mxu1 %v746_v30  ;;  %1050 = vmatprep.mubr.msk.f32.mxu1 %vm1271_vm0, %v1270_v42  ;;  %v573_v42 = vrot.slane %v556_v31, %v256_v20 }
 0x22d   :  { %v644_v34 = vpop.f32.mrf.mxu0  ;;  %v715_v40 = vpop.f32.mrf.mxu1 }
 0x22e   :  { %v645_v35 = vadd.f32 %v644_v34, %v561_v32  ;;  %v716_v43 = vadd.f32 %v715_v40, %v569_v38 }
 0x22f   :  { %v646_v36 = vpop.f32.mrf.mxu0  ;;  %v717_v44 = vpop.f32.mrf.mxu1 }
 0x230   :  { %v720_v37 = vmul.f32 0.5, %v645_v35  ;;  %v647_v39 = vadd.f32 %v646_v36, %v565_v33  ;;  %v718_v45 = vadd.f32 %v717_v44, %v573_v42 }
 0x232   :  { %1079 = vtanh.f32 %v720_v37  ;;  %v724_v41 = vmul.f32 0.5, %v647_v39  ;;  %v729_v46 = vmul.f32 0.5, %v718_v45 }
 0x234   :  { %1081 = vtanh.f32 %v724_v41 }
 0x235   :  { %1083 = vtanh.f32 %v716_v43 }
 0x236   :  { %1085 = vtanh.f32 %v729_v46 }
 0x23f   :  { %v1080_v47 = vpop.eup %1079 }
 0x240   :  { %v722_v48 = vmul.f32 0.5, %v1080_v47 }
 0x241   :  { %v1082_v49 = vpop.eup %1081 }
 0x242   :  { %v723_v50 = vadd.f32 0.5, %v722_v48  ;;  %v726_v51 = vmul.f32 0.5, %v1082_v49  ;;  %v1084_v54 = vpop.eup %1083 }
 0x243   :  { %v1086_v4 = vpop.eup %1085 }
 0x244   :  { %v727_v53 = vadd.f32 0.5, %v726_v51  ;;  %v734_v56 = vmul.f32 %v1084_v54, %v723_v50  ;;  %v731_v20 = vmul.f32 0.5, %v1086_v4 }
 0x246   :  { %v733_v55 = vmul.f32 %v727_v53, %v427_v52  ;;  %v732_v58 = vadd.f32 0.5, %v731_v20 }
 0x248   :  { %v735_v57 = vadd.f32 %v734_v56, %v733_v55 }
 0x24a   :  { %1087 = vtanh.f32 %v735_v57  ;;  %741 = vst [vmem:[#allocation15 + $0x8] sm:$0xff] %v735_v57 }
 0x257   :  { %v1088_v59 = vpop.eup %1087 }
 0x258   :  { %v737_v60 = vmul.f32 %v1088_v59, %v732_v58 }
 0x25a   :  { %874 = vmatmul.mubr.f32.vlgmr.msra.gmra.mxu0 %v737_v60  ;;  %739 = vst [vmem:[#allocation13 + $0x8] sm:$0xff] %v737_v60  ;;  %1051 = vmatmul.mubr.f32.vlgmr.msra.gmra.mxu1 %v737_v60 }
 0x25b   :  { %1200 = shalt.err (!%p1197_p1)
}
 0x25c   :  { %974 = dma.vmem_to_hbm [thread:$0]  %s969_s30, 256, %s1436_s10, [#allocation14], %s1260_s20, %s1260_s20, %s1261_s21  }
 0x25d   :  { %s1273_s14 = smov [#allocation15]  }
 0x25e   :  { %s980_s15 = sshll.u32 %s1273_s14, 4  ;;  %s981_s15 = int_to_ptr.vmem [resolvable:$true] %s980_s15 }
 0x25f   :  { %s1209_s16 = scalar_lea.vmem %s981_s15, 256  ;;  %p1214_p3 = scmp.lt.s32.totalorder %s981_s15, %s981_s15 }
 0x260   :  { %p1210_p2 = scmp.ne.s32.totalorder %s981_s15, %s1209_s16  ;;  %p1215_p4 = scmp.lt.s32.totalorder %s1209_s16, %s1209_s16 }
 0x262   :  { %p1216_p5 = por %p1215_p4, %p1214_p3 }
 0x264   :  { %p1217_p6 = pnand %p1216_p5, %p1210_p2 }
 0x266   :  { %1220 = shalt.err (!%p1217_p6)
}
 0x267   :  { %986 = dma.vmem_to_hbm [thread:$0]  %s981_s15, 256, %s1437_s11, [#allocation14], %s1260_s20, %s1260_s20, %s1261_s21  }
 0x268   :  { %v792_v61 = vld [vmem:[%s1434_s8] sm:$0x7]  ;;  %s1274_s10 = smov [#allocation12]  }
 0x269   :  { %v797_v62 = vrot.slane %v792_v61, %v1362_v5  ;;  %v805_v63 = vrot.slane %v792_v61, %v1372_v9  ;;  %v801_v0 = vrot.slane %v792_v61, %v1368_v7  ;;  %s959_s22 = sshll.u32 %s1274_s10, 4  ;;  %s960_s22 = int_to_ptr.vmem [resolvable:$true] %s959_s22 }
 0x26a   :  { %s1229_s8 = scalar_lea.vmem %s960_s22, 384  ;;  %p1234_p8 = scmp.lt.s32.totalorder %s960_s22, %s960_s22 }
 0x26b   :  { %p1230_p7 = scmp.ne.s32.totalorder %s960_s22, %s1229_s8  ;;  %p1235_p9 = scmp.lt.s32.totalorder %s1229_s8, %s1229_s8 }
 0x26d   :  { %p1236_p10 = por %p1235_p9, %p1234_p8 }
 0x26f   :  { %p1237_p11 = pnand %p1236_p10, %p1230_p7 }
 0x31a   :  { %v875_v1 = vpop.f32.mrf.mxu0  ;;  %v946_v2 = vpop.f32.mrf.mxu1 }
 0x31b   :  { %v876_v3 = vadd.f32 %v875_v1, %v797_v62  ;;  %v947_v6 = vadd.f32 %v946_v2, %v805_v63 }
 0x31c   :  { %v877_v8 = vpop.f32.mrf.mxu0  ;;  %v1052_v10 = vpop.f32.mrf.mxu1 }
 0x31d   :  { %950 = vst [vmem:[#allocation12] sm:$0xff] %v876_v3  ;;  %952 = vst [vmem:[#allocation12 + $0x10] sm:$0xff] %v947_v6  ;;  %v878_v11 = vadd.f32 %v877_v8, %v801_v0 }
 0x31f   :  { %951 = vst [vmem:[#allocation12 + $0x8] sm:$0xff] %v878_v11 }
 0x320   :  { %1240 = shalt.err (!%p1237_p11)
}
 0x321   :  { %962 = dma.vmem_to_hbm [thread:$0]  %s960_s22, 384, %s1435_s9, [#allocation5]  }
 0x322   :  { %1255 = dma.done.wait [#allocation5], 384  }
 0x323   :  { %1256 = vsyncadd [#allocation5], 4294966912 }
 0x324   :  { %1257 = dma.done.wait [#allocation14], 512  }
 0x325   :  { %1258 = vsyncadd [#allocation14], 4294966784 }
 0x326   :  { %996 = vsyncpa [#allocation4], 1 }
 0x327   :  { %997 = vsyncpa [#allocation7], 1 }
 0x328   :  { %998 = vsyncpa [#allocation10], 1 }
 0x329   :  { %999 = vsyncpa [#allocation5], 1 }
 0x32a   :  { %1000 = vsyncpa [#allocation14], 1 }

</bundles_post_ra>
